<compile_context>
chip_gen: v7x
topology: tpu7x:2x2x1
jax: 0.10.0
libtpu: 0.0.40
codegen_flags: <defaults>
</compile_context>

<pallas_src>
import functools

import jax
import jax.numpy as jnp
from jax import lax
from jax.experimental import pallas as pl
from jax.experimental.pallas import tpu as pltpu

_NEG_BIG = -1e30  # bias fill for lane-padded (fake) classes: kills them in max/logsumexp


def _round_up(x, m):
    return ((x + m - 1) // m) * m


# --------------------------------------------------------------------------- #
# Kernels
# --------------------------------------------------------------------------- #
def _compute_tile(x_ref, w_ref, b_ref, t_ref, part_ref, num_classes, logits_ref=None):
    # x_ref: (T, D) f32   w_ref: (D, Cp) bf16 (pre-scaled by 1/scalar)
    # b_ref: (1, Cp) f32  t_ref: (T, 1) int32 (-1 = unlabeled / pad row)
    # part_ref: (1, 8, 128) f32 partial [loss_sum, count]
    # MXU: bf16 x bf16 -> f32 accumulate; x is cast in-kernel.
    logits = jnp.dot(x_ref[...].astype(jnp.bfloat16), w_ref[...],
                     preferred_element_type=jnp.float32) + b_ref[...]
    m = jnp.max(logits, axis=-1, keepdims=True)               # pass 1: row max
    if logits_ref is not None:
        logits_ref[...] = logits.astype(logits_ref.dtype)     # store grouped with pass 1

    # Single extra traversal: s = logits - m feeds both the exp-sum and the
    # target extraction, so per_row = log(sum exp(s)) - s[target] == lse - logits[target].
    s = logits - m
    t = t_ref[...]                                            # (T, 1) int32
    labeled = ((t >= 0) & (t < num_classes)).astype(jnp.float32)
    col = lax.broadcasted_iota(jnp.int32, s.shape, 1)         # (T, Cp)
    sum_exp = jnp.sum(jnp.exp(s), axis=-1, keepdims=True)     # padded lanes -> exp ~ 0
    tgt_s = jnp.sum(jnp.where(col == t, s, 0.0), axis=-1, keepdims=True)
    per_row = jnp.log(sum_exp) - tgt_s                        # (T, 1) f32

    loss_sum = jnp.sum(per_row * labeled)
    count = jnp.sum(labeled)

    # Lane-dense (1, 8, 128) partial block: [0,0,0]=loss_sum, [0,0,1]=count, rest 0.
    lane = lax.broadcasted_iota(jnp.int32, part_ref.shape, 2)
    sub = lax.broadcasted_iota(jnp.int32, part_ref.shape, 1)
    part_ref[...] = jnp.where((sub == 0) & (lane == 0), loss_sum,
                              jnp.where((sub == 0) & (lane == 1), count, 0.0))


def _kernel_with_logits(x_ref, w_ref, b_ref, t_ref, logits_ref, part_ref, *, num_classes):
    _compute_tile(x_ref, w_ref, b_ref, t_ref, part_ref, num_classes, logits_ref=logits_ref)


def _kernel_loss_only(x_ref, w_ref, b_ref, t_ref, part_ref, *, num_classes):
    _compute_tile(x_ref, w_ref, b_ref, t_ref, part_ref, num_classes, logits_ref=None)


# --------------------------------------------------------------------------- #
# VMEM / tile heuristics
# --------------------------------------------------------------------------- #
def _default_vmem_limit():
    try:
        cap = int(pltpu.get_tpu_info().vmem_capacity_bytes)
    except Exception:
        cap = 128 * 1024 * 1024
    # ~3/4 of physical VMEM: 96 MiB on v5e/v6e, ~48 MiB on v7x (64 MiB per TC).
    return max(32 * 1024 * 1024, min(cap * 3 // 4, 96 * 1024 * 1024))


def _vmem_estimate(tile_n, d, c_pad, logits_itemsize, with_logits):
    x_in = 2 * tile_n * d * 4                  # f32 x tiles, double-buffered
    t_in = 2 * tile_n * 128 * 4                # targets column pads to 128 lanes
    w_res = d * c_pad * 2                      # bf16 weight, single-buffered resident
    b_res = 8 * c_pad * 4                      # bias pads to 8 sublanes
    out_l = 2 * tile_n * c_pad * logits_itemsize if with_logits else 0
    out_p = 2 * 8 * 128 * 4
    temps = 4 * tile_n * c_pad * 4             # f32 logits + s + exp/select temporaries
    return x_in + t_in + w_res + b_res + out_l + out_p + temps


def _select_tile_n(n, d, c_pad, logits_itemsize, with_logits, budget):
    tile_n = 256                               # full MXU M on v6e/v7x
    if n > 8:                                  # >= 2 grid steps so v7x's 2 TCs both work
        tile_n = min(tile_n, _round_up(pl.cdiv(n, 2), 8))
    tile_n = max(tile_n, 8)
    while tile_n > 8 and _vmem_estimate(tile_n, d, c_pad, logits_itemsize,
                                        with_logits) > budget:
        tile_n = max(8, (tile_n // 2) // 8 * 8)
    return tile_n


# --------------------------------------------------------------------------- #
# Wrapper
# --------------------------------------------------------------------------- #
def softmax_loss_forward(inputs, targets, weight_t, bias, *, scalar=10.0,
                         tile_n=None, logits_dtype=jnp.bfloat16,
                         return_logits=True, vmem_limit_bytes=None):
    """Forward pass of SoftmaxLoss.

    inputs: (N, D) f32; targets: (N,) int (label id or -1); weight_t: (D, C); bias: (C,).
    Returns (loss, logits[:N, :C]) or (loss, None) when return_logits=False.
    """
    N, D = inputs.shape
    C = weight_t.shape[1]
    C_pad = _round_up(C, 128)                  # lane-dense logits store / full MXU width
    logits_itemsize = jnp.dtype(logits_dtype).itemsize

    if vmem_limit_bytes is None:
        vmem_limit_bytes = _default_vmem_limit()
    if tile_n is None:
        tile_n = _select_tile_n(N, D, C_pad, logits_itemsize, return_logits,
                                int(vmem_limit_bytes * 0.8))
    assert tile_n % 8 == 0, "tile_n must be a multiple of 8 (sublane tiling)"

    n_tiles = pl.cdiv(N, tile_n)
    n_pad = n_tiles * tile_n

    # x streams as f32 (bf16 cast happens in-kernel); 1/scalar folded into the weight.
    x = inputs.astype(jnp.float32)
    t = targets.reshape(N, 1).astype(jnp.int32)
    if n_pad != N:
        x = jnp.pad(x, ((0, n_pad - N), (0, 0)))
        t = jnp.pad(t, ((0, n_pad - N), (0, 0)), constant_values=-1)  # pad rows unlabeled
    w = weight_t.astype(jnp.float32) * (1.0 / scalar)
    b = bias.astype(jnp.float32)
    if C_pad != C:
        w = jnp.pad(w, ((0, 0), (0, C_pad - C)))
        b = jnp.pad(b, (0, C_pad - C), constant_values=_NEG_BIG)
    w = w.astype(jnp.bfloat16)
    b = b.reshape(1, C_pad)

    part_spec = pl.BlockSpec((1, 8, 128), lambda i: (i, 0, 0))
    part_shape = jax.ShapeDtypeStruct((n_tiles, 8, 128), jnp.float32)

    if return_logits:
        kernel = functools.partial(_kernel_with_logits, num_classes=C)
        out_specs = (pl.BlockSpec((tile_n, C_pad), lambda i: (i, 0)), part_spec)
        out_shape = (jax.ShapeDtypeStruct((n_pad, C_pad), logits_dtype), part_shape)
    else:
        kernel = functools.partial(_kernel_loss_only, num_classes=C)
        out_specs = part_spec
        out_shape = part_shape

    def make_in_specs(single_buffer_resident):
        res_kwargs = dict(pipeline_mode=pl.Buffered(1)) if single_buffer_resident else {}
        return [
            pl.BlockSpec((tile_n, D), lambda i: (i, 0)),               # x tile (streamed)
            pl.BlockSpec((D, C_pad), lambda i: (0, 0), **res_kwargs),  # weight (resident)
            pl.BlockSpec((1, C_pad), lambda i: (0, 0), **res_kwargs),  # bias (resident)
            pl.BlockSpec((tile_n, 1), lambda i: (i, 0)),               # targets tile
        ]

    outs = None
    for single_buffer_resident in (True, False):
        try:
            outs = pl.pallas_call(
                kernel,
                grid=(n_tiles,),
                in_specs=make_in_specs(single_buffer_resident),
                out_specs=out_specs,
                out_shape=out_shape,
                compiler_params=pltpu.CompilerParams(
                    dimension_semantics=("parallel",),  # per-tile partials => megacore-safe
                    vmem_limit_bytes=int(vmem_limit_bytes),
                ),
            )(x, w, b, t)
            break
        except Exception:
            # Fallback if this build rejects Buffered(1) on the resident weight/bias;
            # default (double-buffered) residents are still correct, just use more VMEM.
            if not single_buffer_resident:
                raise

    if return_logits:
        logits_pad, partials = outs
        logits = logits_pad[:N, :C]
    else:
        partials = outs
        logits = None

    loss_sum = jnp.sum(partials[:, 0, 0])
    count = jnp.sum(partials[:, 0, 1])
    loss = loss_sum / jnp.maximum(count, 1.0)   # size_average=True over labeled rows
    return loss, logits


# --------------------------------------------------------------------------- #
# Reference + test
# --------------------------------------------------------------------------- #
def _reference(inputs, targets, weight_t, bias, scalar=10.0):
    logits = (inputs / scalar) @ weight_t + bias
    labeled = targets >= 0
    lse = jax.nn.logsumexp(logits, axis=-1)
    tgt = jnp.take_along_axis(logits, jnp.maximum(targets, 0)[:, None], axis=-1)[:, 0]
    per_row = lse - tgt
    loss = jnp.sum(jnp.where(labeled, per_row, 0.0)) / jnp.maximum(jnp.sum(labeled), 1)
    return loss, logits


if __name__ == "__main__":
    N = 40            # number of proposals (small for the test)
    D = 256           # fc input features (hardcoded nn.Linear(256, C) in the module)
    C = 100           # num_labeled_pids; NOT a multiple of 128 -> exercises lane padding
    scalar = 10.0

    key = jax.random.PRNGKey(0)
    kx, kw, kb, kt, km = jax.random.split(key, 5)
    x = jax.random.normal(kx, (N, D), dtype=jnp.float32)
    # fc params (nn.Linear(256, C)): weight [C, D] stored pre-transposed as [D, C].
    weight_t = (jax.random.normal(kw, (C, D), dtype=jnp.float32) * 0.05).T
    bias = jax.random.normal(kb, (C,), dtype=jnp.float32) * 0.01
    # Mixed labeled (>=0) / unlabeled (-1) targets.
    labels = jax.random.randint(kt, (N,), 0, C)
    unlabeled = jax.random.uniform(km, (N,)) < 0.3
    targets = jnp.where(unlabeled, -1, labels).astype(jnp.int32)

    # tile_n=16 exercises a multi-step grid + row padding at this tiny N; the
    # auto-selected tile (VMEM-budgeted, >=2 grid steps) is used when tile_n=None.
    loss, logits = softmax_loss_forward(x, targets, weight_t, bias,
                                        scalar=scalar, tile_n=16)
    # Loss-only path: drops the logits HBM writeback and uses auto tile selection.
    loss_only, _ = softmax_loss_forward(x, targets, weight_t, bias,
                                        scalar=scalar, return_logits=False)
    jax.block_until_ready((loss, logits, loss_only))

    ref_loss, ref_logits = _reference(x, targets, weight_t, bias, scalar)
    assert jnp.allclose(loss, ref_loss, atol=2e-2, rtol=2e-2), (loss, ref_loss)
    assert jnp.allclose(loss_only, ref_loss, atol=2e-2, rtol=2e-2), (loss_only, ref_loss)
    assert jnp.allclose(logits.astype(jnp.float32), ref_logits, atol=2e-2, rtol=2e-2)

    print("KERNEL_OK")
</pallas_src>

<mosaic_0001>
module attributes {stable_mosaic.version = 11 : i64} {
  func.func @_kernel_with_logits(%arg0: i32, %arg1: memref<16x256xf32, #tpu.memory_space<vmem>>, %arg2: memref<256x128xbf16, #tpu.memory_space<vmem>>, %arg3: memref<1x128xf32, #tpu.memory_space<vmem>>, %arg4: memref<16x1xi32, #tpu.memory_space<vmem>>, %arg5: memref<16x128xbf16, #tpu.memory_space<vmem>>, %arg6: memref<1x8x128xf32, #tpu.memory_space<vmem>>) attributes {dimension_semantics = [#tpu.dimension_semantics<parallel>], iteration_bounds = array<i64: 3>, scalar_prefetch = 0 : i64, scratch_operands = 0 : i64, tpu.core_type = #tpu.core_type<tc>, window_params = [{transform_indices = @transform_0, window_bounds = array<i64: 16, 256>}, {pipeline_mode = #tpu.pipeline_mode<synchronous>, transform_indices = @transform_1, window_bounds = array<i64: 256, 128>}, {pipeline_mode = #tpu.pipeline_mode<synchronous>, transform_indices = @transform_2, window_bounds = array<i64: 1, 128>}, {transform_indices = @transform_3, window_bounds = array<i64: 16, 1>}, {transform_indices = @transform_4, window_bounds = array<i64: 16, 128>}, {transform_indices = @transform_5, window_bounds = array<i64: 1, 8, 128>}]} {
    %c0 = arith.constant 0 : index
    %c0_0 = arith.constant 0 : index
    %0 = vector.load %arg1[%c0, %c0_0] : memref<16x256xf32, #tpu.memory_space<vmem>>, vector<16x256xf32>
    %1 = arith.truncf %0 : vector<16x256xf32> to vector<16x256xbf16>
    %c0_1 = arith.constant 0 : index
    %c0_2 = arith.constant 0 : index
    %2 = vector.load %arg2[%c0_1, %c0_2] : memref<256x128xbf16, #tpu.memory_space<vmem>>, vector<256x128xbf16>
    %cst = arith.constant dense<0.000000e+00> : vector<16x128xf32>
    %3 = tpu.matmul %1, %2, %cst {dimension_numbers = #tpu.dot_dimension_numbers<[1], [0], [0], [1], [0, 0, 1, 1], [], []>} : vector<16x256xbf16>, vector<256x128xbf16>, vector<16x128xf32> -> vector<16x128xf32>
    %c0_3 = arith.constant 0 : index
    %c0_4 = arith.constant 0 : index
    %4 = vector.load %arg3[%c0_3, %c0_4] : memref<1x128xf32, #tpu.memory_space<vmem>>, vector<1x128xf32>
    %5 = vector.broadcast %4 : vector<1x128xf32> to vector<16x128xf32>
    %6 = arith.addf %3, %5 : vector<16x128xf32>
    %cst_5 = arith.constant dense<0xFF800000> : vector<16xf32>
    %7 = vector.multi_reduction <maximumf>, %6, %cst_5 [1] : vector<16x128xf32> to vector<16xf32>
    %8 = vector.shape_cast %7 : vector<16xf32> to vector<16x1xf32>
    %9 = arith.truncf %6 : vector<16x128xf32> to vector<16x128xbf16>
    %c0_6 = arith.constant 0 : index
    %c0_7 = arith.constant 0 : index
    %10 = vector.load %arg5[%c0_6, %c0_7] : memref<16x128xbf16, #tpu.memory_space<vmem>>, vector<16x128xbf16>
    tpu.vector_store %arg5[%c0_6, %c0_7], %9 {strides = array<i32>} : memref<16x128xbf16, #tpu.memory_space<vmem>>, vector<16x128xbf16>,
    %11 = vector.broadcast %8 : vector<16x1xf32> to vector<16x128xf32>
    %12 = arith.subf %6, %11 : vector<16x128xf32>
    %c0_8 = arith.constant 0 : index
    %c0_9 = arith.constant 0 : index
    %13 = vector.load %arg4[%c0_8, %c0_9] : memref<16x1xi32, #tpu.memory_space<vmem>>, vector<16x1xi32>
    %c0_i32 = arith.constant 0 : i32
    %14 = vector.broadcast %c0_i32 : i32 to vector<16x1xi32>
    %15 = arith.cmpi sge, %13, %14 : vector<16x1xi32>
    %c100_i32 = arith.constant 100 : i32
    %16 = vector.broadcast %c100_i32 : i32 to vector<16x1xi32>
    %17 = arith.cmpi slt, %13, %16 : vector<16x1xi32>
    %18 = arith.andi %15, %17 : vector<16x1xi1>
    %19 = arith.extui %18 : vector<16x1xi1> to vector<16x1xi32>
    %20 = arith.sitofp %19 : vector<16x1xi32> to vector<16x1xf32>
    %21 = tpu.iota {dimensions = array<i32: 1>} : vector<16x128xi32>
    %22 = math.exp %12 : vector<16x128xf32>
    %cst_10 = arith.constant dense<0.000000e+00> : vector<16xf32>
    %23 = vector.multi_reduction <add>, %22, %cst_10 [1] : vector<16x128xf32> to vector<16xf32>
    %24 = vector.shape_cast %23 : vector<16xf32> to vector<16x1xf32>
    %25 = vector.broadcast %13 : vector<16x1xi32> to vector<16x128xi32>
    %26 = arith.cmpi eq, %21, %25 : vector<16x128xi32>
    %cst_11 = arith.constant 0.000000e+00 : f32
    %27 = vector.broadcast %cst_11 : f32 to vector<16x128xf32>
    %28 = arith.select %26, %12, %27 : vector<16x128xi1>, vector<16x128xf32>
    %cst_12 = arith.constant dense<0.000000e+00> : vector<16xf32>
    %29 = vector.multi_reduction <add>, %28, %cst_12 [1] : vector<16x128xf32> to vector<16xf32>
    %30 = vector.shape_cast %29 : vector<16xf32> to vector<16x1xf32>
    %31 = math.log %24 : vector<16x1xf32>
    %32 = arith.subf %31, %30 : vector<16x1xf32>
    %33 = arith.mulf %32, %20 : vector<16x1xf32>
    %34 = vector.shape_cast %33 : vector<16x1xf32> to vector<1x16x1xf32>
    %cst_13 = arith.constant dense<0.000000e+00> : vector<1xf32>
    %35 = vector.multi_reduction <add>, %34, %cst_13 [1, 2] : vector<1x16x1xf32> to vector<1xf32>
    %36 = vector.shape_cast %35 : vector<1xf32> to vector<1x1x1xf32>
    %37 = vector.extract %36[0, 0, 0] : f32 from vector<1x1x1xf32>
    %38 = vector.shape_cast %20 : vector<16x1xf32> to vector<1x16x1xf32>
    %cst_14 = arith.constant dense<0.000000e+00> : vector<1xf32>
    %39 = vector.multi_reduction <add>, %38, %cst_14 [1, 2] : vector<1x16x1xf32> to vector<1xf32>
    %40 = vector.shape_cast %39 : vector<1xf32> to vector<1x1x1xf32>
    %41 = vector.extract %40[0, 0, 0] : f32 from vector<1x1x1xf32>
    %42 = tpu.iota {dimensions = array<i32: 2>} : vector<1x8x128xi32>
    %43 = tpu.iota {dimensions = array<i32: 1>} : vector<1x8x128xi32>
    %c0_i32_15 = arith.constant 0 : i32
    %44 = vector.broadcast %c0_i32_15 : i32 to vector<1x8x128xi32>
    %45 = arith.cmpi eq, %43, %44 : vector<1x8x128xi32>
    %c0_i32_16 = arith.constant 0 : i32
    %46 = vector.broadcast %c0_i32_16 : i32 to vector<1x8x128xi32>
    %47 = arith.cmpi eq, %42, %46 : vector<1x8x128xi32>
    %48 = arith.andi %45, %47 : vector<1x8x128xi1>
    %c0_i32_17 = arith.constant 0 : i32
    %49 = vector.broadcast %c0_i32_17 : i32 to vector<1x8x128xi32>
    %50 = arith.cmpi eq, %43, %49 : vector<1x8x128xi32>
    %c1_i32 = arith.constant 1 : i32
    %51 = vector.broadcast %c1_i32 : i32 to vector<1x8x128xi32>
    %52 = arith.cmpi eq, %42, %51 : vector<1x8x128xi32>
    %53 = arith.andi %50, %52 : vector<1x8x128xi1>
    %cst_18 = arith.constant 0.000000e+00 : f32
    %54 = vector.broadcast %41 : f32 to vector<1x8x128xf32>
    %55 = vector.broadcast %cst_18 : f32 to vector<1x8x128xf32>
    %56 = arith.select %53, %54, %55 : vector<1x8x128xi1>, vector<1x8x128xf32>
    %57 = vector.broadcast %37 : f32 to vector<1x8x128xf32>
    %58 = arith.select %48, %57, %56 : vector<1x8x128xi1>, vector<1x8x128xf32>
    %c0_19 = arith.constant 0 : index
    %c0_20 = arith.constant 0 : index
    %c0_21 = arith.constant 0 : index
    %59 = vector.load %arg6[%c0_19, %c0_20, %c0_21] : memref<1x8x128xf32, #tpu.memory_space<vmem>>, vector<1x8x128xf32>
    tpu.vector_store %arg6[%c0_19, %c0_20, %c0_21], %58 {strides = array<i32>} : memref<1x8x128xf32, #tpu.memory_space<vmem>>, vector<1x8x128xf32>,
    return
  }
  func.func @transform_0(%arg0: i32) -> (i32, i32) {
    %c0_i32 = arith.constant 0 : i32
    %c0_i32_0 = arith.constant 0 : i32
    return %arg0, %c0_i32 : i32, i32
  }
  func.func @transform_1(%arg0: i32) -> (i32, i32) {
    %c0_i32 = arith.constant 0 : i32
    %c0_i32_0 = arith.constant 0 : i32
    %c0_i32_1 = arith.constant 0 : i32
    return %c0_i32, %c0_i32_0 : i32, i32
  }
  func.func @transform_2(%arg0: i32) -> (i32, i32) {
    %c0_i32 = arith.constant 0 : i32
    %c0_i32_0 = arith.constant 0 : i32
    %c0_i32_1 = arith.constant 0 : i32
    return %c0_i32, %c0_i32_0 : i32, i32
  }
  func.func @transform_3(%arg0: i32) -> (i32, i32) {
    %c0_i32 = arith.constant 0 : i32
    %c0_i32_0 = arith.constant 0 : i32
    return %arg0, %c0_i32 : i32, i32
  }
  func.func @transform_4(%arg0: i32) -> (i32, i32) {
    %c0_i32 = arith.constant 0 : i32
    %c0_i32_0 = arith.constant 0 : i32
    return %arg0, %c0_i32 : i32, i32
  }
  func.func @transform_5(%arg0: i32) -> (i32, i32, i32) {
    %c0_i32 = arith.constant 0 : i32
    %c0_i32_0 = arith.constant 0 : i32
    %c0_i32_1 = arith.constant 0 : i32
    return %arg0, %c0_i32, %c0_i32_0 : i32, i32, i32
  }
}

module attributes {stable_mosaic.version = 11 : i64} {
  func.func @_kernel_with_logits(%arg0: i32, %arg1: memref<16x256xf32, #tpu.memory_space<vmem>>, %arg2: memref<256x128xbf16, #tpu.memory_space<vmem>>, %arg3: memref<1x128xf32, #tpu.memory_space<vmem>>, %arg4: memref<16x1xi32, #tpu.memory_space<vmem>>, %arg5: memref<16x128xbf16, #tpu.memory_space<vmem>>, %arg6: memref<1x8x128xf32, #tpu.memory_space<vmem>>) attributes {dimension_semantics = [#tpu.dimension_semantics<parallel>], iteration_bounds = array<i64: 3>, scalar_prefetch = 0 : i64, scratch_operands = 0 : i64, tpu.core_type = #tpu.core_type<tc>, window_params = [{transform_indices = @transform_0, window_bounds = array<i64: 16, 256>}, {pipeline_mode = #tpu.pipeline_mode<synchronous>, transform_indices = @transform_1, window_bounds = array<i64: 256, 128>}, {pipeline_mode = #tpu.pipeline_mode<synchronous>, transform_indices = @transform_2, window_bounds = array<i64: 1, 128>}, {transform_indices = @transform_3, window_bounds = array<i64: 16, 1>}, {transform_indices = @transform_4, window_bounds = array<i64: 16, 128>}, {transform_indices = @transform_5, window_bounds = array<i64: 1, 8, 128>}]} {
    %c0 = arith.constant 0 : index
    %c0_0 = arith.constant 0 : index
    %0 = vector.load %arg1[%c0, %c0_0] : memref<16x256xf32, #tpu.memory_space<vmem>>, vector<16x256xf32>
    %1 = arith.truncf %0 : vector<16x256xf32> to vector<16x256xbf16>
    %c0_1 = arith.constant 0 : index
    %c0_2 = arith.constant 0 : index
    %2 = vector.load %arg2[%c0_1, %c0_2] : memref<256x128xbf16, #tpu.memory_space<vmem>>, vector<256x128xbf16>
    %cst = arith.constant dense<0.000000e+00> : vector<16x128xf32>
    %3 = tpu.matmul %1, %2, %cst {dimension_numbers = #tpu.dot_dimension_numbers<[1], [0], [0], [1], [0, 0, 1, 1], [], []>} : vector<16x256xbf16>, vector<256x128xbf16>, vector<16x128xf32> -> vector<16x128xf32>
    %c0_3 = arith.constant 0 : index
    %c0_4 = arith.constant 0 : index
    %4 = vector.load %arg3[%c0_3, %c0_4] : memref<1x128xf32, #tpu.memory_space<vmem>>, vector<1x128xf32>
    %5 = vector.broadcast %4 : vector<1x128xf32> to vector<16x128xf32>
    %6 = arith.addf %3, %5 : vector<16x128xf32>
    %cst_5 = arith.constant dense<0xFF800000> : vector<16xf32>
    %7 = vector.multi_reduction <maximumf>, %6, %cst_5 [1] : vector<16x128xf32> to vector<16xf32>
    %8 = vector.shape_cast %7 : vector<16xf32> to vector<16x1xf32>
    %9 = arith.truncf %6 : vector<16x128xf32> to vector<16x128xbf16>
    %c0_6 = arith.constant 0 : index
    %c0_7 = arith.constant 0 : index
    %10 = vector.load %arg5[%c0_6, %c0_7] : memref<16x128xbf16, #tpu.memory_space<vmem>>, vector<16x128xbf16>
    tpu.vector_store %arg5[%c0_6, %c0_7], %9 {strides = array<i32>} : memref<16x128xbf16, #tpu.memory_space<vmem>>, vector<16x128xbf16>,
    %11 = vector.broadcast %8 : vector<16x1xf32> to vector<16x128xf32>
    %12 = arith.subf %6, %11 : vector<16x128xf32>
    %c0_8 = arith.constant 0 : index
    %c0_9 = arith.constant 0 : index
    %13 = vector.load %arg4[%c0_8, %c0_9] : memref<16x1xi32, #tpu.memory_space<vmem>>, vector<16x1xi32>
    %c0_i32 = arith.constant 0 : i32
    %14 = vector.broadcast %c0_i32 : i32 to vector<16x1xi32>
    %15 = arith.cmpi sge, %13, %14 : vector<16x1xi32>
    %c100_i32 = arith.constant 100 : i32
    %16 = vector.broadcast %c100_i32 : i32 to vector<16x1xi32>
    %17 = arith.cmpi slt, %13, %16 : vector<16x1xi32>
    %18 = arith.andi %15, %17 : vector<16x1xi1>
    %19 = arith.extui %18 : vector<16x1xi1> to vector<16x1xi32>
    %20 = arith.sitofp %19 : vector<16x1xi32> to vector<16x1xf32>
    %21 = tpu.iota {dimensions = array<i32: 1>} : vector<16x128xi32>
    %22 = math.exp %12 : vector<16x128xf32>
    %cst_10 = arith.constant dense<0.000000e+00> : vector<16xf32>
    %23 = vector.multi_reduction <add>, %22, %cst_10 [1] : vector<16x128xf32> to vector<16xf32>
    %24 = vector.shape_cast %23 : vector<16xf32> to vector<16x1xf32>
    %25 = vector.broadcast %13 : vector<16x1xi32> to vector<16x128xi32>
    %26 = arith.cmpi eq, %21, %25 : vector<16x128xi32>
    %cst_11 = arith.constant 0.000000e+00 : f32
    %27 = vector.broadcast %cst_11 : f32 to vector<16x128xf32>
    %28 = arith.select %26, %12, %27 : vector<16x128xi1>, vector<16x128xf32>
    %cst_12 = arith.constant dense<0.000000e+00> : vector<16xf32>
    %29 = vector.multi_reduction <add>, %28, %cst_12 [1] : vector<16x128xf32> to vector<16xf32>
    %30 = vector.shape_cast %29 : vector<16xf32> to vector<16x1xf32>
    %31 = math.log %24 : vector<16x1xf32>
    %32 = arith.subf %31, %30 : vector<16x1xf32>
    %33 = arith.mulf %32, %20 : vector<16x1xf32>
    %34 = vector.shape_cast %33 : vector<16x1xf32> to vector<1x16x1xf32>
    %cst_13 = arith.constant dense<0.000000e+00> : vector<1xf32>
    %35 = vector.multi_reduction <add>, %34, %cst_13 [1, 2] : vector<1x16x1xf32> to vector<1xf32>
    %36 = vector.shape_cast %35 : vector<1xf32> to vector<1x1x1xf32>
    %37 = vector.extract %36[0, 0, 0] : f32 from vector<1x1x1xf32>
    %38 = vector.shape_cast %20 : vector<16x1xf32> to vector<1x16x1xf32>
    %cst_14 = arith.constant dense<0.000000e+00> : vector<1xf32>
    %39 = vector.multi_reduction <add>, %38, %cst_14 [1, 2] : vector<1x16x1xf32> to vector<1xf32>
    %40 = vector.shape_cast %39 : vector<1xf32> to vector<1x1x1xf32>
    %41 = vector.extract %40[0, 0, 0] : f32 from vector<1x1x1xf32>
    %42 = tpu.iota {dimensions = array<i32: 2>} : vector<1x8x128xi32>
    %43 = tpu.iota {dimensions = array<i32: 1>} : vector<1x8x128xi32>
    %c0_i32_15 = arith.constant 0 : i32
    %44 = vector.broadcast %c0_i32_15 : i32 to vector<1x8x128xi32>
    %45 = arith.cmpi eq, %43, %44 : vector<1x8x128xi32>
    %c0_i32_16 = arith.constant 0 : i32
    %46 = vector.broadcast %c0_i32_16 : i32 to vector<1x8x128xi32>
    %47 = arith.cmpi eq, %42, %46 : vector<1x8x128xi32>
    %48 = arith.andi %45, %47 : vector<1x8x128xi1>
    %c0_i32_17 = arith.constant 0 : i32
    %49 = vector.broadcast %c0_i32_17 : i32 to vector<1x8x128xi32>
    %50 = arith.cmpi eq, %43, %49 : vector<1x8x128xi32>
    %c1_i32 = arith.constant 1 : i32
    %51 = vector.broadcast %c1_i32 : i32 to vector<1x8x128xi32>
    %52 = arith.cmpi eq, %42, %51 : vector<1x8x128xi32>
    %53 = arith.andi %50, %52 : vector<1x8x128xi1>
    %cst_18 = arith.constant 0.000000e+00 : f32
    %54 = vector.broadcast %41 : f32 to vector<1x8x128xf32>
    %55 = vector.broadcast %cst_18 : f32 to vector<1x8x128xf32>
    %56 = arith.select %53, %54, %55 : vector<1x8x128xi1>, vector<1x8x128xf32>
    %57 = vector.broadcast %37 : f32 to vector<1x8x128xf32>
    %58 = arith.select %48, %57, %56 : vector<1x8x128xi1>, vector<1x8x128xf32>
    %c0_19 = arith.constant 0 : index
    %c0_20 = arith.constant 0 : index
    %c0_21 = arith.constant 0 : index
    %59 = vector.load %arg6[%c0_19, %c0_20, %c0_21] : memref<1x8x128xf32, #tpu.memory_space<vmem>>, vector<1x8x128xf32>
    tpu.vector_store %arg6[%c0_19, %c0_20, %c0_21], %58 {strides = array<i32>} : memref<1x8x128xf32, #tpu.memory_space<vmem>>, vector<1x8x128xf32>,
    return
  }
  func.func @transform_0(%arg0: i32) -> (i32, i32) {
    %c0_i32 = arith.constant 0 : i32
    %c0_i32_0 = arith.constant 0 : i32
    return %arg0, %c0_i32 : i32, i32
  }
  func.func @transform_1(%arg0: i32) -> (i32, i32) {
    %c0_i32 = arith.constant 0 : i32
    %c0_i32_0 = arith.constant 0 : i32
    %c0_i32_1 = arith.constant 0 : i32
    return %c0_i32, %c0_i32_0 : i32, i32
  }
  func.func @transform_2(%arg0: i32) -> (i32, i32) {
    %c0_i32 = arith.constant 0 : i32
    %c0_i32_0 = arith.constant 0 : i32
    %c0_i32_1 = arith.constant 0 : i32
    return %c0_i32, %c0_i32_0 : i32, i32
  }
  func.func @transform_3(%arg0: i32) -> (i32, i32) {
    %c0_i32 = arith.constant 0 : i32
    %c0_i32_0 = arith.constant 0 : i32
    return %arg0, %c0_i32 : i32, i32
  }
  func.func @transform_4(%arg0: i32) -> (i32, i32) {
    %c0_i32 = arith.constant 0 : i32
    %c0_i32_0 = arith.constant 0 : i32
    return %arg0, %c0_i32 : i32, i32
  }
  func.func @transform_5(%arg0: i32) -> (i32, i32, i32) {
    %c0_i32 = arith.constant 0 : i32
    %c0_i32_0 = arith.constant 0 : i32
    %c0_i32_1 = arith.constant 0 : i32
    return %arg0, %c0_i32, %c0_i32_0 : i32, i32, i32
  }
}

</mosaic_0001>

<bundles_post_ra>
// kernel: tpu_custom_call.1
= control target key start
LH: loop header
LB: loop body
LE: loop exit
PB: predicated region body
PF: predicated region fallthrough
CT: control target
= control target key end

     0   :  { %11 = vsyncpa [#allocation3], 0  ;;  %s1583_s0 = inlined_call_operand.hbm [shape: f32[48,256], index: 0, kind: input, shape index: {}]   ;;  %s1584_s1 = inlined_call_operand.hbm [shape: bf16[256,128], index: 1, kind: input, shape index: {}]   ;;  %s1585_s2 = inlined_call_operand.hbm [shape: f32[1,128], index: 2, kind: input, shape index: {}]   ;;  %s1586_s3 = inlined_call_operand.hbm [shape: s32[48,1], index: 3, kind: input, shape index: {}]   ;;  %s1587_s4 = inlined_call_operand.hbm [shape: bf16[48,128], index: 4, kind: output, shape index: {0}]   ;;  %s1588_s5 = inlined_call_operand.hbm [shape: f32[3,8,128], index: 5, kind: output, shape index: {1}]  }
   0x1   :  { %13 = vsyncpa [#allocation3 + $0x1], 0 }
   0x2   :  { %14 = vsyncpa [#allocation6], 0 }
   0x3   :  { %15 = vsyncpa [#allocation9], 0 }
   0x4   :  { %17 = vsyncpa [#allocation9 + $0x1], 0 }
   0x5   :  { %18 = vsyncpa [#allocation4], 0 }
   0x6   :  { %20 = vsyncpa [#allocation4 + $0x1], 0 }
   0x7   :  { %21 = vsyncpa [#allocation12], 0 }
   0x8   :  { %23 = vsyncpa [#allocation12 + $0x1], 0  ;;  %s1251_s18 = smov 0   ;;  %s1253_s19 = smov 0  }
   0x9   :  { %s1255_s20 = smov 0   ;;  %s1257_s21 = smov 0  }
   0xa LB: > { %s1272_s22 = sadd.s32 4294967295, %s1203_s21   ;;  %s784_s23 = sadd.s32 4294967294, %s1203_s21   ;;  %s1203_s21 = sphi %s1257_s21, %s1612_s21   ;;  %s1199_s20 = sphi %s1255_s20, %s1616_s20   ;;  %s1195_s19 = sphi %s1253_s19, %s1615_s19   ;;  %s1191_s18 = sphi %s1251_s18, %s1614_s18  }
   0xb   : > { %s1276_s24 = sadd.s32 1, %s1203_s21   ;;  %s36_s25 = sadd.s32 1, %s1199_s20 }
   0xc   : > { %1595 = sst [smem:[#allocation18_spill]] %s1276_s24  ;;  %s33_s26 = ssub.s32 %s1203_s21, %s1276_s24 }
   0xd   : > { %p43_p0 = scmp.ne.s32.totalorder %s1199_s20, %s1195_s19  ;;  %p34_p1 = scmp.eq.s32.totalorder %s33_s26, 0 }
   0xe   : > { %p44_p2 = scmp.eq.s32.totalorder %s1203_s21, 0  ;;  %p49_p3 = scmp.ne.s32.totalorder %s1195_s19, %s1191_s18 }
   0xf   : > { %p1589_p4 = scmp.eq.s32.totalorder %s1272_s22, 0  ;;  %p141_p7 = scmp.eq.s32.totalorder %s1272_s22, 2 }
  0x10   : > { %s1288_s27 = scalar_select %p34_p1, %s1199_s20, %s36_s25  }
  0x11   : > { %p1290_p5 = por %p44_p2, %p43_p0  ;;  %p1296_p6 = por %p1589_p4, %p49_p3 }
  0x12   : > { %1596 = sst [smem:[#allocation19_spill]] %s1288_s27  ;;  %p147_p8 = scmp.eq.s32.totalorder %s784_s23, 2 }
  0x13   : > { %s1597_s28 = scalar_select %p1290_p5, 1, 0 }
  0x14   : > { %s1598_s29 = scalar_select %p1296_p6, 1, 0 }
  0x15   : > { %p785_p9 = scmp.ge.s32.totalorder %s1203_s21, 1  ;;  %p180_p10 = scmp.lt.s32.totalorder %s1203_s21, 4 }
  0x16   : > { %p1303_p11 = por %p141_p7, %p43_p0  ;;  %p1307_p12 = por %p147_p8, %p49_p3 }
  0x17   : > { %p1311_p13 = pnand %p785_p9, %p180_p10  ;;  %s1205_s8 = smov [#allocation5]  }
  0x18   : > { %s1599_s30 = scalar_select %p1303_p11, 1, 0 }
  0x19   : > { %s1600_s6 = scalar_select %p1307_p12, 1, 0 }
  0x1a   : > { %s1601_s7 = scalar_select %p1311_p13, 1, 0 }
  0x1b   : > { %p884_p1 = pneg %p1311_p13  ;;  %s192_s9 = sshll.u32 %s1205_s8, 4  ;;  %s193_s9 = int_to_ptr.vmem [resolvable:$true] %s192_s9 }
  0x1c   : > { %s1206_s11 = smov [#allocation7]   ;;  %s981_s15 = scalar_lea.hbm %s1584_s1, 2048 }
  0x1d   : > { %p1319_p2 = pnand %p884_p1, %p1589_p4  ;;  %s206_s12 = sshll.u32 %s1206_s11, 4  ;;  %s207_s12 = int_to_ptr.vmem [resolvable:$true] %s206_s12 }
  0x1e   : > { %p982_p3 = scmp.ne.s32.totalorder %s1584_s1, %s981_s15  ;;  %p988_p10 = scmp.lt.u32.totalorder %s981_s15, %s1584_s1 }
  0x1f   : > { %p983_p7 = pneg %p1319_p2 }
  0x21   : > { %p984_p8 = pnand %p983_p7, %p982_p3 }
  0x23   : > { %p985_p9 = pneg %p984_p8 }
  0x25   : > { %p990_p1 = pnand %p988_p10, %p985_p9 }
  0x27   : > { %993 = shalt.err (!%p990_p1)
}
  0x28   : > { %s994_s26 = scalar_lea.vmem %s193_s9, 2048  ;;  %p1002_p11 = scmp.lt.s32.totalorder %s193_s9, %s193_s9 }
  0x29   : > { %p995_p4 = scmp.ne.s32.totalorder %s193_s9, %s994_s26  ;;  %p1003_p6 = scmp.lt.s32.totalorder %s994_s26, %s994_s26 }
  0x2b   : > { %p997_p0 = pnand %p995_p4, %p983_p7  ;;  %p1004_p13 = por %p1003_p6, %p1002_p11 }
  0x2d   : > { %p998_p12 = pneg %p997_p0 }
  0x2f   : > { %p1005_p5 = pnand %p1004_p13, %p998_p12 }
  0x31   : > { %1008 = shalt.err (!%p1005_p5)
}
  0x32   : > { %s1207_s8 = smov 64   ;;  %s1208_s11 = smov 4  }
  0x33   : > { %887 = dma.hbm_to_vmem [thread:$0]  (!%p1319_p2), %s1584_s1, 2048, %s193_s9, [#allocation6], %s1207_s8, %s1207_s8, %s1208_s11  }
  0x34   : > { %s1347_s15 = sand.u32 1, %s1199_s20   ;;  %s1009_s23 = scalar_lea.hbm %s1585_s2, 16 }
  0x35   : > { %p1010_p4 = scmp.ne.s32.totalorder %s1585_s2, %s1009_s23  ;;  %p1016_p11 = scmp.lt.u32.totalorder %s1009_s23, %s1585_s2 }
  0x37   : > { %p1012_p5 = pnand %p1010_p4, %p983_p7 }
  0x39   : > { %p1013_p6 = pneg %p1012_p5 }
  0x3b   : > { %p1018_p12 = pnand %p1016_p11, %p1013_p6 }
  0x3d   : > { %1021 = shalt.err (!%p1018_p12)
}
  0x3e   : > { %s1022_s9 = scalar_lea.vmem %s207_s12, 16  ;;  %s1029_s8 = scalar_lea.vmem %s207_s12, 32 }
  0x3f   : > { %p1023_p13 = scmp.ne.s32.totalorder %s207_s12, %s1022_s9  ;;  %p1030_p8 = scmp.lt.s32.totalorder %s207_s12, %s207_s12 }
  0x40   : > { %p1031_p9 = scmp.lt.s32.totalorder %s1029_s8, %s1022_s9 }
  0x41   : > { %p1025_p0 = pnand %p1023_p13, %p983_p7 }
  0x42   : > { %p1032_p10 = por %p1031_p9, %p1030_p8 }
  0x43   : > { %p1026_p3 = pneg %p1025_p0 }
  0x45   : > { %p1033_p1 = pnand %p1032_p10, %p1026_p3 }
  0x47   : > { %1036 = shalt.err (!%p1033_p1)
}
  0x48   : > { %890 = dma.hbm_to_vmem [thread:$0]  (!%p1319_p2), %s1585_s2, 16, %s207_s12, [#allocation6]  }
  0x49   : > { %s789_s27 = sshll.u32 %s1347_s15, 5  ;;  %s832_s13 = sshll.u32 %s1203_s21, 9 }
  0x4a   : > { %s1374_s17 = scalar_lea.hbm %s1583_s0, %s832_s13  ;;  %s221_s10 = scalar_lea.vmem [#allocation2], %s789_s27 }
  0x4b   : > { %s229_s23 = sshll.u32 %s221_s10, 4  ;;  %p1603_p7 = scmp.ne.s32.totalorder %s1597_s28, 0  ;;  %s1376_s23 = int_to_ptr.vmem [resolvable:$true] %s229_s23 }
  0x4c   : > { %p1604_p4 = scmp.lt.s32.totalorder %s1203_s21, 3  ;;  %s218_s12 = scalar_lea.sflag [#allocation3], %s1347_s15 }
  0x4d   : > { %s1037_s26 = scalar_lea.hbm %s1374_s17, 512  ;;  %s1042_s28 = scalar_lea.hbm %s1583_s0, 1536 }
  0x4e   : > { %p1382_p5 = pnand %p1604_p4, %p1603_p7  ;;  %p1038_p2 = scmp.ne.s32.totalorder %s1374_s17, %s1037_s26 }
  0x4f   : > { %p1043_p13 = scmp.lt.u32.totalorder %s1374_s17, %s1583_s0  ;;  %p1044_p0 = scmp.lt.u32.totalorder %s1042_s28, %s1037_s26 }
  0x50   : > { %p1039_p6 = pneg %p1382_p5  ;;  %p1046_p8 = scmp.lt.u32.totalorder %s1037_s26, %s1374_s17 }
  0x51   : > { %p1045_p3 = por %p1044_p0, %p1043_p13 }
  0x52   : > { %p1040_p11 = pnand %p1039_p6, %p1038_p2 }
  0x53   : > { %p1047_p9 = por %p1046_p8, %p1045_p3 }
  0x54   : > { %p1041_p12 = pneg %p1040_p11 }
  0x56   : > { %p1048_p10 = pnand %p1047_p9, %p1041_p12 }
  0x58   : > { %1051 = shalt.err (!%p1048_p10)
}
  0x59   : > { %s1052_s27 = scalar_lea.vmem %s1376_s23, 512  ;;  %s1209_s13 = smov [#allocation2]  }
  0x5a   : > { %p1053_p1 = scmp.ne.s32.totalorder %s1376_s23, %s1052_s27  ;;  %s1057_s14 = sshll.u32 %s1209_s13, 4  ;;  %s1058_s14 = int_to_ptr.vmem [resolvable:$false] %s1057_s14 }
  0x5b   : > { %s1059_s16 = scalar_lea.vmem %s1058_s14, 1024  ;;  %p1060_p2 = scmp.lt.s32.totalorder %s1376_s23, %s1058_s14 }
  0x5c   : > { %p1055_p7 = pnand %p1053_p1, %p1039_p6  ;;  %p1061_p11 = scmp.lt.s32.totalorder %s1059_s16, %s1052_s27 }
  0x5e   : > { %p1056_p4 = pneg %p1055_p7  ;;  %p1062_p13 = por %p1061_p11, %p1060_p2 }
  0x60   : > { %p1063_p0 = pnand %p1062_p13, %p1056_p4 }
  0x62   : > { %1066 = shalt.err (!%p1063_p0)
}
  0x63   : > { %s1210_s10 = smov 256   ;;  %s1211_s26 = smov 16  }
  0x64   : > { %894 = dma.hbm_to_vmem [thread:$0]  (!%p1382_p5), %s1374_s17, 512, %s1376_s23, %s218_s12, %s1210_s10, %s1210_s10, %s1211_s26  }
  0x65   : > { %s793_s9 = sshll.u32 %s1347_s15, 4  ;;  %s833_s8 = sshll.u32 %s1203_s21, 8 }
  0x66   : > { %s1419_s24 = scalar_lea.hbm %s1586_s3, %s833_s8  ;;  %s243_s27 = scalar_lea.vmem [#allocation8], %s793_s9 }
  0x67   : > { %s250_s13 = sshll.u32 %s243_s27, 4  ;;  %s240_s14 = scalar_lea.sflag [#allocation9], %s1347_s15  ;;  %s1421_s13 = int_to_ptr.vmem [resolvable:$true] %s250_s13 }
  0x68   : > { %s1067_s16 = scalar_lea.hbm %s1419_s24, 256  ;;  %s1072_s12 = scalar_lea.hbm %s1586_s3, 768 }
  0x69   : > { %p1068_p12 = scmp.ne.s32.totalorder %s1419_s24, %s1067_s16  ;;  %p1073_p9 = scmp.lt.u32.totalorder %s1419_s24, %s1586_s3 }
  0x6a   : > { %p1074_p10 = scmp.lt.u32.totalorder %s1072_s12, %s1067_s16  ;;  %p1076_p7 = scmp.lt.u32.totalorder %s1067_s16, %s1419_s24 }
  0x6b   : > { %p1070_p3 = pnand %p1068_p12, %p1039_p6 }
  0x6c   : > { %p1075_p1 = por %p1074_p10, %p1073_p9 }
  0x6d   : > { %p1071_p8 = pneg %p1070_p3 }
  0x6e   : > { %p1077_p4 = por %p1076_p7, %p1075_p1 }
  0x70   : > { %p1078_p2 = pnand %p1077_p4, %p1071_p8 }
  0x72   : > { %1081 = shalt.err (!%p1078_p2)
}
  0x73   : > { %s1082_s9 = scalar_lea.vmem %s1421_s13, 256  ;;  %s1212_s8 = smov [#allocation8]  }
  0x74   : > { %p1083_p11 = scmp.ne.s32.totalorder %s1421_s13, %s1082_s9  ;;  %s1087_s28 = sshll.u32 %s1212_s8, 4  ;;  %s1088_s28 = int_to_ptr.vmem [resolvable:$false] %s1087_s28 }
  0x75   : > { %s1089_s11 = scalar_lea.vmem %s1088_s28, 512  ;;  %p1090_p12 = scmp.lt.s32.totalorder %s1421_s13, %s1088_s28 }
  0x76   : > { %p1085_p13 = pnand %p1083_p11, %p1039_p6  ;;  %p1091_p3 = scmp.lt.s32.totalorder %s1089_s11, %s1082_s9 }
  0x78   : > { %p1086_p0 = pneg %p1085_p13  ;;  %p1092_p9 = por %p1091_p3, %p1090_p12 }
  0x7a   : > { %p1093_p10 = pnand %p1092_p9, %p1086_p0 }
  0x7c   : > { %1096 = shalt.err (!%p1093_p10)
}
  0x7d   : > { %s1213_s27 = smov 128   ;;  %s1214_s16 = smov 8  }
  0x7e   : > { %897 = dma.hbm_to_vmem [thread:$0]  (!%p1382_p5), %s1419_s24, 256, %s1421_s13, %s240_s14, %s1213_s27, %s1213_s27, %s1214_s16  }
  0x7f   : > { %p1606_p6 = scmp.ne.s32.totalorder %s1601_s7, 0 }
  0x80   : > { %s1452_s17 = sand.u32 (!%p1606_p6), 1, %s1195_s19   ;;  %p1607_p8 = scmp.ne.s32.totalorder (!%p1606_p6), %s1598_s29, 0 }
  0x81   : > { %262 = sbr.rel (%p1606_p6) target bundleno = 941 (0x3ad), region = 36  ;;  %s797_s23 = sshll.u32 (!%p1606_p6), %s1452_s17, 5 }
  0x82   : > { %s265_s12 = scalar_lea.sflag (!%p1606_p6), [#allocation3], %s1452_s17  ;;  %s1456_s10 = scalar_lea.vmem (!%p1606_p6), [#allocation2], %s797_s23 }
  0x88   : > { %1170 = dma.done.wait (%p1607_p8), %s265_s12, 512  }
  0x89   : > { %1172 = vsyncadd (%p1607_p8), %s265_s12, 4294966784  ;;  %p1608_p5 = scmp.eq.s32.totalorder %s1272_s22, 0 }
  0x8b   : > { %1174 = dma.done.wait (%p1608_p5), [#allocation6], 2064   ;;  %p1609_p1 = pmov %p1608_p5 }
  0x8c   : > { %s800_s7 = sshll.u32 %s1452_s17, 4  ;;  %s282_s15 = scalar_lea.sflag [#allocation9], %s1452_s17 }
  0x8d   : > { %1176 = vsyncadd (%p1609_p1), [#allocation6], 4294965232  ;;  %s1468_s25 = scalar_lea.vmem [#allocation8], %s800_s7 }
  0x8e   : > { %1178 = dma.done.wait (%p1607_p8), %s282_s15, 256  }
  0x8f   : > { %1180 = vsyncadd (%p1607_p8), %s282_s15, 4294967040  ;;  %v957_v0 = vld [vmem:[#allocation5 + $0x40] sm:$0xff]   ;;  %v959_v2 = vld [vmem:[#allocation5 + $0x48] sm:$0xff]   ;;  %v1215_v23 = vmov 0   ;;  %s801_s29 = sshll.u32 %s1452_s17, 3  ;;  %v536_v41 = vlaneseq  ;;  %v1216_v49 = vmov 0.0  }
  0x90   : > { %v958_v1 = vld [vmem:[#allocation5] sm:$0xff]   ;;  %842 = vmatprep.subr.bf16.mxu0 %v957_v0  ;;  %v960_v3 = vld [vmem:[#allocation5 + $0x8] sm:$0xff]   ;;  %v961_v4 = vld [vmem:[#allocation5 + $0x50] sm:$0xff]   ;;  %955 = vset.pattern.permute.xlu1 %v1215_v23  ;;  %s1483_s24 = scalar_lea.vmem [#allocation10], %s801_s29  ;;  %vm568_vm8 = vcmask 7168   ;;  %s836_s14 = sshll.u32 %s1272_s22, 7 }
  0x91   : > { %843 = vmatpush3.bf16.msra.mxu0 %v958_v1  ;;  %v962_v5 = vld [vmem:[#allocation5 + $0x10] sm:$0xff]   ;;  %v963_v6 = vld [vmem:[#allocation5 + $0x58] sm:$0xff]   ;;  %v965_v8 = vld [vmem:[#allocation5 + $0x60] sm:$0xff]   ;;  %956 = vset.pattern.permute.xlu0 %v1215_v23  ;;  %v1487_v43 = vand.u32 127, %v536_v41  ;;  %s624_s13 = sshll.u32 %s1483_s24, 4  ;;  %s1504_s8 = scalar_lea.hbm %s1587_s4, %s836_s14  ;;  %s1497_s13 = int_to_ptr.vmem [resolvable:$true] %s624_s13 }
  0x92   : > { %844 = vmatprep.subr.bf16.mxu0 %v959_v2  ;;  %v964_v7 = vld [vmem:[#allocation5 + $0x18] sm:$0xff]   ;;  %v966_v9 = vld [vmem:[#allocation5 + $0x20] sm:$0xff]   ;;  %v967_v10 = vld [vmem:[#allocation5 + $0x68] sm:$0xff]   ;;  %s606_s28 = scalar_lea.sflag [#allocation4], %s1452_s17  ;;  %s1097_s11 = scalar_lea.vmem %s1497_s13, 128 }
  0x93   : > { %v327_v11 = vld [vmem:[%s1456_s10 + $0x8] sm:$0xff]  ;;  %v329_v12 = vld [vmem:[%s1456_s10 + $0x18] sm:$0xff]  ;;  %v969_v15 = vld [vmem:[#allocation5 + $0x70] sm:$0xff]   ;;  %p1098_p7 = scmp.ne.s32.totalorder %s1497_s13, %s1097_s11  ;;  %p1610_p4 = scmp.ne.s32.totalorder %s1599_s30, 0 }
  0x94   : > { %v331_v13 = vpack.c.bf16 %v329_v12, %v327_v11  ;;  %v968_v14 = vld [vmem:[#allocation5 + $0x28] sm:$0xff]   ;;  %v970_v16 = vld [vmem:[#allocation5 + $0x30] sm:$0xff]   ;;  %v971_v17 = vld [vmem:[#allocation5 + $0x78] sm:$0xff]   ;;  %s1217_s27 = smov [#allocation10]  }
  0x95   : > { %845 = vmatpush3.bf16.msra.mxu0 %v960_v3  ;;  %v972_v18 = vld [vmem:[#allocation5 + $0x38] sm:$0xff]   ;;  %v326_v19 = vld [vmem:[%s1456_s10] sm:$0xff]  ;;  %v328_v20 = vld [vmem:[%s1456_s10 + $0x10] sm:$0xff]  ;;  %p1099_p2 = pnand %p1098_p7, %p1610_p4  ;;  %s1101_s16 = sshll.u32 %s1217_s27, 4  ;;  %s1102_s16 = int_to_ptr.vmem [resolvable:$false] %s1101_s16 }
  0x96   : > { %846 = vmatprep.subr.bf16.mxu0 %v961_v4  ;;  %499 = vmatprep.mubr.bf16.mxu0 %v331_v13  ;;  %v330_v21 = vpack.c.bf16 %v328_v20, %v326_v19  ;;  %v524_v22 = vld [vmem:[%s1468_s25] sm:$0xff]  ;;  %v525_v24 = vld [vmem:[%s1468_s25 + $0x8] sm:$0xff]  ;;  %s1103_s23 = scalar_lea.vmem %s1102_s16, 256  ;;  %p1104_p13 = scmp.lt.s32.totalorder %s1497_s13, %s1102_s16 }
  0x97   : > { %547 = vperm.xlu1 %955, %v524_v22   ;;  %v803_v26 = vld [vmem:[#allocation7] ss:$0 sm:$0xff]  ;;  %vm526_vm2 = vcmp.ge.s32.totalorder %v524_v22, 0  ;;  %vm528_vm3 = vcmp.lt.s32.totalorder %v524_v22, 100  ;;  %vm527_vm4 = vcmp.ge.s32.totalorder %v525_v24, 0  ;;  %vm529_vm5 = vcmp.lt.s32.totalorder %v525_v24, 100  ;;  %p1100_p11 = pneg %p1099_p2  ;;  %p1105_p0 = scmp.lt.s32.totalorder %s1103_s23, %s1097_s11 }
  0x98   : > { %vm530_vm6 = vmand %vm526_vm2, %vm528_vm3 }
  0x99   : > { %847 = vmatpush3.bf16.msra.mxu0 %v962_v5  ;;  %vm531_vm7 = vmand %vm527_vm4, %vm529_vm5  ;;  %v822_v50 = vsel %vm530_vm6, 1.0, %v1216_v49  ;;  %p1106_p12 = por %p1105_p0, %p1104_p13 }
  0x9a   : > { %848 = vmatprep.subr.bf16.mxu0 %v963_v6  ;;  %v823_v51 = vsel %vm531_vm7, 1.0, %v1216_v49  ;;  %v581_v52 = vsel %vm568_vm8, %v822_v50, 0.0 }
  0x9b   : > { %550 = vperm.xlu1 %955, %v525_v24   ;;  %v582_v53 = vsel %vm568_vm8, %v823_v51, 0.0  ;;  %p1107_p3 = pnand %p1106_p12, %p1100_p11 }
  0x9c   : > { %v583_v54 = vadd.f32 %v582_v53, %v581_v52 }
  0x9d   : > { %849 = vmatpush3.bf16.msra.mxu0 %v964_v7 }
  0x9e   : > { %850 = vmatprep.subr.bf16.mxu0 %v965_v8 }
  0xa1   : > { %851 = vmatpush3.bf16.msra.mxu0 %v966_v9 }
  0xa2   : > { %852 = vmatprep.subr.bf16.mxu0 %v967_v10 }
  0xa5   : > { %853 = vmatpush3.bf16.msra.mxu0 %v968_v14 }
  0xa6   : > { %854 = vmatprep.subr.bf16.mxu0 %v969_v15 }
  0xa9   : > { %855 = vmatpush3.bf16.msra.mxu0 %v970_v16 }
  0xaa   : > { %856 = vmatprep.subr.bf16.mxu0 %v971_v17 }
  0xad   : > { %857 = vmatpush3.bf16.msra.mxu0 %v972_v18 }
  0xb0   : > { %500 = vmatmul.mubr.bf16.vlgmr.msra.gmra.mrb[0].mxu0 %v330_v21 }
 0x116   : > { %v548_v42 = vpop.permute.xlu1 %547 }
 0x117   : > { %vm552_vm0 = vcmp.eq.s32.totalorder %v1487_v43, %v548_v42 }
 0x11a   : > { %v551_v45 = vpop.permute.xlu1 %550 }
 0x11b   : > { %vm553_vm1 = vcmp.eq.s32.totalorder %v1487_v43, %v551_v45 }
 0x183   : > { %v858_v25 = vpop.f32.mrb[0].mxu0 }
 0x184   : > { %v859_v27 = vpop.f32.mrb[1].mxu0 }
 0x185   : > { %v860_v28 = vadd.f32 %v859_v27, %v858_v25  ;;  %v861_v29 = vpop.f32.mrb[2].mxu0 }
 0x186   : > { %v862_v30 = vpop.f32.mrb[3].mxu0 }
 0x187   : > { %v502_v31 = vadd.f32 %v860_v28, %v803_v26  ;;  %v863_v32 = vadd.f32 %v862_v30, %v861_v29 }
 0x189   : > { %v505_v33 = vadd.f32 %v863_v32, %v803_v26  ;;  %508 = vmax.xlane.f32.xlu0 %v502_v31 }
 0x18b   : > { %v840_v34 = vpack.c.bf16 %v505_v33, %v502_v31 }
 0x18d   : > { %510 = vmax.xlane.f32.xlu0 %v505_v33  ;;  %841 = vst [vmem:[%s1483_s24] sm:$0xff] %v840_v34  }
 0x216   : > { %v509_v35 = vpop.xlane.xlu0 %508 }
 0x217   : > { %v522_v36 = vsub.f32 %v502_v31, %v509_v35 }
 0x219   : > { %v538_v37 = vmul.f32 1.442695, %v522_v36  ;;  %v554_v47 = vsel %vm552_vm0, %v522_v36, 0.0 }
 0x21a   : > { %v511_v38 = vpop.xlane.xlu0 %510 }
 0x21b   : > { %973 = vpow2.f32 %v538_v37  ;;  %v523_v39 = vsub.f32 %v505_v33, %v511_v38 }
 0x21d   : > { %v540_v40 = vmul.f32 1.442695, %v523_v39  ;;  %v555_v48 = vsel %vm553_vm1, %v523_v39, 0.0 }
 0x21f   : > { %975 = vpow2.f32 %v540_v40 }
 0x225   : > { %v974_v44 = vpop.eup %973 }
 0x226   : > { %542 = vadd.xlane.f32.xlu0 %v974_v44 }
 0x229   : > { %v976_v46 = vpop.eup %975 }
 0x22a   : > { %556 = vadd.xlane.f32.xlu0 %v554_v47  ;;  %544 = vadd.xlane.f32.xlu1 %v976_v46 }
 0x22e   : > { %558 = vadd.xlane.f32.xlu0 %v555_v48 }
 0x2b3   : > { %v543_v55 = vpop.xlane.xlu0 %542 }
 0x2b4   : > { %977 = vlog2.f32 %v543_v55 }
 0x2b7   : > { %v545_v56 = vpop.xlane.xlu1 %544  ;;  %v557_v58 = vpop.xlane.xlu0 %556 }
 0x2b8   : > { %979 = vlog2.f32 %v545_v56 }
 0x2bb   : > { %v559_v63 = vpop.xlane.xlu0 %558 }
 0x2be   : > { %v978_v57 = vpop.eup %977 }
 0x2bf   : > { %v561_v59 = vmul.f32 0.6931472, %v978_v57 }
 0x2c1   : > { %v564_v60 = vsub.f32 %v561_v59, %v557_v58 }
 0x2c2   : > { %v980_v61 = vpop.eup %979 }
 0x2c3   : > { %v563_v62 = vmul.f32 0.6931472, %v980_v61  ;;  %v566_v0 = vmul.f32 %v822_v50, %v564_v60 }
 0x2c5   : > { %v565_v1 = vsub.f32 %v563_v62, %v559_v63  ;;  %v569_v3 = vsel %vm568_vm8, %v566_v0, 0.0 }
 0x2c7   : > { %v567_v2 = vmul.f32 %v823_v51, %v565_v1 }
 0x2c9   : > { %v570_v4 = vsel %vm568_vm8, %v567_v2, 0.0 }
 0x2ca   : > { %v571_v5 = vadd.f32 %v570_v4, %v569_v3 }
 0x2cc   : > { %572 = vadd.xlane.f32.xlu0 %v571_v5 }
 0x2d0   : > { %584 = vadd.xlane.f32.xlu0 %v583_v54 }
 0x2d1   : > { %1110 = shalt.err (!%p1107_p3)
}
 0x2d2   : > { %s1111_s12 = scalar_lea.hbm %s1504_s8, 128  ;;  %s1115_s15 = scalar_lea.hbm %s1587_s4, 384 }
 0x2d3   : > { %p1112_p9 = scmp.ne.s32.totalorder %s1504_s8, %s1111_s12  ;;  %p1116_p8 = scmp.lt.u32.totalorder %s1504_s8, %s1587_s4 }
 0x2d4   : > { %p1117_p5 = scmp.lt.u32.totalorder %s1115_s15, %s1111_s12  ;;  %p1119_p7 = scmp.lt.u32.totalorder %s1111_s12, %s1504_s8 }
 0x2d5   : > { %p1113_p10 = pnand %p1112_p9, %p1610_p4 }
 0x2d6   : > { %p1118_p1 = por %p1117_p5, %p1116_p8 }
 0x2d7   : > { %p1114_p6 = pneg %p1113_p10 }
 0x2d8   : > { %p1120_p2 = por %p1119_p7, %p1118_p1 }
 0x2da   : > { %p1121_p11 = pnand %p1120_p2, %p1114_p6 }
 0x2dc   : > { %1124 = shalt.err (!%p1121_p11)
}
 0x2dd   : > { %s1218_s26 = smov 64   ;;  %s1219_s9 = smov 4   ;;  %v594_v20 = vshrl.u32 %v536_v41, 7  ;;  %vm598_vm10 = vcmp.eq.s32.totalorder %v1487_v43, 1  ;;  %vm596_vm11 = vcmp.eq.s32.totalorder %v1487_v43, 0 }
 0x2de   : > { %880 = dma.vmem_to_hbm [thread:$0]  (%p1610_p4), %s1497_s13, 128, %s1504_s8, %s606_s28, %s1218_s26, %s1218_s26, %s1219_s9  }
 0x2df   : > { %vm595_vm9 = vcmp.eq.s32.totalorder %v594_v20, 0  ;;  %s321_s8 = scalar_lea.vmem [#allocation11], %s801_s29  ;;  %s1540_s23 = scalar_lea.hbm %s1588_s5, %s836_s14 }
 0x2e0   : > { %vm599_vm12 = vmand %vm595_vm9, %vm598_vm10  ;;  %s640_s28 = sshll.u32 %s321_s8, 4  ;;  %s611_s29 = scalar_lea.sflag [#allocation12], %s1452_s17  ;;  %s1542_s28 = int_to_ptr.vmem [resolvable:$true] %s640_s28 }
 0x2e1   : > { %vm597_vm13 = vmand %vm595_vm9, %vm596_vm11  ;;  %s1125_s12 = scalar_lea.vmem %s1542_s28, 128  ;;  %s1220_s10 = smov [#allocation11]  }
 0x2e2   : > { %p1126_p13 = scmp.ne.s32.totalorder %s1542_s28, %s1125_s12  ;;  %s1129_s22 = sshll.u32 %s1220_s10, 4  ;;  %s1130_s22 = int_to_ptr.vmem [resolvable:$false] %s1129_s22 }
 0x2e3   : > { %s1131_s7 = scalar_lea.vmem %s1130_s22, 256  ;;  %p1132_p3 = scmp.lt.s32.totalorder %s1542_s28, %s1130_s22 }
 0x2e4   : > { %p1127_p0 = pnand %p1126_p13, %p1610_p4  ;;  %p1133_p9 = scmp.lt.s32.totalorder %s1131_s7, %s1125_s12 }
 0x2e6   : > { %p1128_p12 = pneg %p1127_p0  ;;  %p1134_p10 = por %p1133_p9, %p1132_p3 }
 0x2e8   : > { %p1135_p6 = pnand %p1134_p10, %p1128_p12 }
 0x359   : > { %v573_v6 = vpop.xlane.xlu0 %572 }
 0x35a   : > { %v574_v7 = vrot.slane %v573_v6, 4 }
 0x35c   : > { %v575_v8 = vadd.f32 %v574_v7, %v573_v6 }
 0x35d   : > { %v585_v9 = vpop.xlane.xlu0 %584 }
 0x35e   : > { %v576_v10 = vrot.slane %v575_v8, 2  ;;  %v586_v11 = vrot.slane %v585_v9, 4 }
 0x360   : > { %v587_v12 = vadd.f32 %v586_v11, %v585_v9  ;;  %v577_v13 = vadd.f32 %v576_v10, %v575_v8 }
 0x362   : > { %v588_v14 = vrot.slane %v587_v12, 2  ;;  %v578_v15 = vrot.slane %v577_v13, 1 }
 0x364   : > { %v589_v16 = vadd.f32 %v588_v14, %v587_v12  ;;  %v579_v17 = vadd.f32 %v578_v15, %v577_v13 }
 0x366   : > { %864 = vpush %v579_v17  ;;  %v590_v18 = vrot.slane %v589_v16, 1 }
 0x368   : > { %v591_v19 = vadd.f32 %v590_v18, %v589_v16 }
 0x36a   : > { %866 = vpush %v591_v19 }
 0x397   : > { %s865_s13 = spop %864 }
 0x398   : > { %v602_v22 = vstv %s865_s13 }
 0x39b   : > { %s867_s11 = spop %866 }
 0x39c   : > { %v600_v21 = vstv %s867_s11 }
 0x39d   : > { %v601_v23 = vsel %vm599_vm12, %v600_v21, 0.0 }
 0x39e   : > { %v603_v24 = vsel %vm597_vm13, %v602_v22, %v601_v23 }
 0x39f   : > { %604 = vst [vmem:[%s321_s8] sm:$0xff] %v603_v24 }
 0x3a0   : > { %1138 = shalt.err (!%p1135_p6)
}
 0x3a1   : > { %s1139_s17 = scalar_lea.hbm %s1540_s23, 128  ;;  %s1143_s25 = scalar_lea.hbm %s1588_s5, 384 }
 0x3a2   : > { %p1140_p8 = scmp.ne.s32.totalorder %s1540_s23, %s1139_s17  ;;  %p1144_p7 = scmp.lt.u32.totalorder %s1540_s23, %s1588_s5 }
 0x3a3   : > { %p1145_p2 = scmp.lt.u32.totalorder %s1143_s25, %s1139_s17  ;;  %p1147_p13 = scmp.lt.u32.totalorder %s1139_s17, %s1540_s23 }
 0x3a4   : > { %p1141_p5 = pnand %p1140_p8, %p1610_p4 }
 0x3a5   : > { %p1146_p11 = por %p1145_p2, %p1144_p7 }
 0x3a6   : > { %p1142_p1 = pneg %p1141_p5 }
 0x3a7   : > { %p1148_p0 = por %p1147_p13, %p1146_p11 }
 0x3a9   : > { %p1149_p12 = pnand %p1148_p0, %p1142_p1 }
 0x3ab   : > { %1152 = shalt.err (!%p1149_p12)
}
 0x3ac   : > { %881 = dma.vmem_to_hbm [thread:$0]  (%p1610_p4), %s1542_s28, 128, %s1540_s23, %s611_s29  }
 0x3ad PF: > { %p910_p3 = scmp.ge.s32.totalorder %s1203_s21, 2  ;;  %s652_s9 = sand.u32 1, %s1191_s18  }
 0x3ae   : > { %p1611_p9 = scmp.ne.s32.totalorder %s1600_s6, 0  ;;  %s653_s13 = scalar_lea.sflag [#allocation4], %s652_s9 }
 0x3b0   : > { %p899_p10 = pnand %p910_p3, %p1611_p9 }
 0x3b2   : > { %1182 = dma.done.wait (!%p899_p10), %s653_s13, 128  }
 0x3b3   : > { %1184 = vsyncadd (!%p899_p10), %s653_s13, 4294967168  ;;  %s662_s8 = scalar_lea.sflag [#allocation12], %s652_s9 }
 0x3b4   : > { %1186 = dma.done.wait (!%p899_p10), %s662_s8, 128  }
 0x3b5   : > { %1188 = vsyncadd (!%p899_p10), %s662_s8, 4294967168  ;;  %s1612_s21 = sld [smem:[#allocation18_spill]]  ;;  %s1613_s30 = sld [smem:[#allocation19_spill]] }
 0x3b6   : > { %s1614_s18 = smov %s1195_s19  ;;  %s1615_s19 = smov %s1199_s20 }
 0x3bb   : > { %p26_p4 = scmp.ge.s32.totalorder %s1612_s21, 5   ;;  %s1616_s20 = smov %s1613_s30 }
 0x3bd   :  { %28 = sbr.rel (!%p26_p4) target bundleno = 10 (0xa), region = 119 }
 0x3c4   :  { %667 = vsyncpa [#allocation3], 1 }
 0x3c5   :  { %669 = vsyncpa [#allocation3 + $0x1], 1 }
 0x3c6   :  { %670 = vsyncpa [#allocation6], 1 }
 0x3c7   :  { %671 = vsyncpa [#allocation9], 1 }
 0x3c8   :  { %673 = vsyncpa [#allocation9 + $0x1], 1 }
 0x3c9   :  { %674 = vsyncpa [#allocation4], 1 }
 0x3ca   :  { %676 = vsyncpa [#allocation4 + $0x1], 1 }
 0x3cb   :  { %677 = vsyncpa [#allocation12], 1 }
 0x3cc   :  { %679 = vsyncpa [#allocation12 + $0x1], 1 }

// kernel: tpu_custom_call.1
= control target key start
LH: loop header
LB: loop body
LE: loop exit
PB: predicated region body
PF: predicated region fallthrough
CT: control target
= control target key end

     0   :  { %11 = vsyncpa [#allocation3], 0  ;;  %s1583_s0 = inlined_call_operand.hbm [shape: f32[48,256], index: 0, kind: input, shape index: {}]   ;;  %s1584_s1 = inlined_call_operand.hbm [shape: bf16[256,128], index: 1, kind: input, shape index: {}]   ;;  %s1585_s2 = inlined_call_operand.hbm [shape: f32[1,128], index: 2, kind: input, shape index: {}]   ;;  %s1586_s3 = inlined_call_operand.hbm [shape: s32[48,1], index: 3, kind: input, shape index: {}]   ;;  %s1587_s4 = inlined_call_operand.hbm [shape: bf16[48,128], index: 4, kind: output, shape index: {0}]   ;;  %s1588_s5 = inlined_call_operand.hbm [shape: f32[3,8,128], index: 5, kind: output, shape index: {1}]  }
   0x1   :  { %13 = vsyncpa [#allocation3 + $0x1], 0 }
   0x2   :  { %14 = vsyncpa [#allocation6], 0 }
   0x3   :  { %15 = vsyncpa [#allocation9], 0 }
   0x4   :  { %17 = vsyncpa [#allocation9 + $0x1], 0 }
   0x5   :  { %18 = vsyncpa [#allocation4], 0 }
   0x6   :  { %20 = vsyncpa [#allocation4 + $0x1], 0 }
   0x7   :  { %21 = vsyncpa [#allocation12], 0 }
   0x8   :  { %23 = vsyncpa [#allocation12 + $0x1], 0  ;;  %s1251_s18 = smov 0   ;;  %s1253_s19 = smov 0  }
   0x9   :  { %s1255_s20 = smov 0   ;;  %s1257_s21 = smov 0  }
   0xa LB: > { %s1272_s22 = sadd.s32 4294967295, %s1203_s21   ;;  %s784_s23 = sadd.s32 4294967294, %s1203_s21   ;;  %s1203_s21 = sphi %s1257_s21, %s1612_s21   ;;  %s1199_s20 = sphi %s1255_s20, %s1616_s20   ;;  %s1195_s19 = sphi %s1253_s19, %s1615_s19   ;;  %s1191_s18 = sphi %s1251_s18, %s1614_s18  }
   0xb   : > { %s1276_s24 = sadd.s32 1, %s1203_s21   ;;  %s36_s25 = sadd.s32 1, %s1199_s20 }
   0xc   : > { %1595 = sst [smem:[#allocation18_spill]] %s1276_s24  ;;  %s33_s26 = ssub.s32 %s1203_s21, %s1276_s24 }
   0xd   : > { %p43_p0 = scmp.ne.s32.totalorder %s1199_s20, %s1195_s19  ;;  %p34_p1 = scmp.eq.s32.totalorder %s33_s26, 0 }
   0xe   : > { %p44_p2 = scmp.eq.s32.totalorder %s1203_s21, 0  ;;  %p49_p3 = scmp.ne.s32.totalorder %s1195_s19, %s1191_s18 }
   0xf   : > { %p1589_p4 = scmp.eq.s32.totalorder %s1272_s22, 0  ;;  %p141_p7 = scmp.eq.s32.totalorder %s1272_s22, 2 }
  0x10   : > { %s1288_s27 = scalar_select %p34_p1, %s1199_s20, %s36_s25  }
  0x11   : > { %p1290_p5 = por %p44_p2, %p43_p0  ;;  %p1296_p6 = por %p1589_p4, %p49_p3 }
  0x12   : > { %1596 = sst [smem:[#allocation19_spill]] %s1288_s27  ;;  %p147_p8 = scmp.eq.s32.totalorder %s784_s23, 2 }
  0x13   : > { %s1597_s28 = scalar_select %p1290_p5, 1, 0 }
  0x14   : > { %s1598_s29 = scalar_select %p1296_p6, 1, 0 }
  0x15   : > { %p785_p9 = scmp.ge.s32.totalorder %s1203_s21, 1  ;;  %p180_p10 = scmp.lt.s32.totalorder %s1203_s21, 4 }
  0x16   : > { %p1303_p11 = por %p141_p7, %p43_p0  ;;  %p1307_p12 = por %p147_p8, %p49_p3 }
  0x17   : > { %p1311_p13 = pnand %p785_p9, %p180_p10  ;;  %s1205_s8 = smov [#allocation5]  }
  0x18   : > { %s1599_s30 = scalar_select %p1303_p11, 1, 0 }
  0x19   : > { %s1600_s6 = scalar_select %p1307_p12, 1, 0 }
  0x1a   : > { %s1601_s7 = scalar_select %p1311_p13, 1, 0 }
  0x1b   : > { %p884_p1 = pneg %p1311_p13  ;;  %s192_s9 = sshll.u32 %s1205_s8, 4  ;;  %s193_s9 = int_to_ptr.vmem [resolvable:$true] %s192_s9 }
  0x1c   : > { %s1206_s11 = smov [#allocation7]   ;;  %s981_s15 = scalar_lea.hbm %s1584_s1, 2048 }
  0x1d   : > { %p1319_p2 = pnand %p884_p1, %p1589_p4  ;;  %s206_s12 = sshll.u32 %s1206_s11, 4  ;;  %s207_s12 = int_to_ptr.vmem [resolvable:$true] %s206_s12 }
  0x1e   : > { %p982_p3 = scmp.ne.s32.totalorder %s1584_s1, %s981_s15  ;;  %p988_p10 = scmp.lt.u32.totalorder %s981_s15, %s1584_s1 }
  0x1f   : > { %p983_p7 = pneg %p1319_p2 }
  0x21   : > { %p984_p8 = pnand %p983_p7, %p982_p3 }
  0x23   : > { %p985_p9 = pneg %p984_p8 }
  0x25   : > { %p990_p1 = pnand %p988_p10, %p985_p9 }
  0x27   : > { %993 = shalt.err (!%p990_p1)
}
  0x28   : > { %s994_s26 = scalar_lea.vmem %s193_s9, 2048  ;;  %p1002_p11 = scmp.lt.s32.totalorder %s193_s9, %s193_s9 }
  0x29   : > { %p995_p4 = scmp.ne.s32.totalorder %s193_s9, %s994_s26  ;;  %p1003_p6 = scmp.lt.s32.totalorder %s994_s26, %s994_s26 }
  0x2b   : > { %p997_p0 = pnand %p995_p4, %p983_p7  ;;  %p1004_p13 = por %p1003_p6, %p1002_p11 }
  0x2d   : > { %p998_p12 = pneg %p997_p0 }
  0x2f   : > { %p1005_p5 = pnand %p1004_p13, %p998_p12 }
  0x31   : > { %1008 = shalt.err (!%p1005_p5)
}
  0x32   : > { %s1207_s8 = smov 64   ;;  %s1208_s11 = smov 4  }
  0x33   : > { %887 = dma.hbm_to_vmem [thread:$0]  (!%p1319_p2), %s1584_s1, 2048, %s193_s9, [#allocation6], %s1207_s8, %s1207_s8, %s1208_s11  }
  0x34   : > { %s1347_s15 = sand.u32 1, %s1199_s20   ;;  %s1009_s23 = scalar_lea.hbm %s1585_s2, 16 }
  0x35   : > { %p1010_p4 = scmp.ne.s32.totalorder %s1585_s2, %s1009_s23  ;;  %p1016_p11 = scmp.lt.u32.totalorder %s1009_s23, %s1585_s2 }
  0x37   : > { %p1012_p5 = pnand %p1010_p4, %p983_p7 }
  0x39   : > { %p1013_p6 = pneg %p1012_p5 }
  0x3b   : > { %p1018_p12 = pnand %p1016_p11, %p1013_p6 }
  0x3d   : > { %1021 = shalt.err (!%p1018_p12)
}
  0x3e   : > { %s1022_s9 = scalar_lea.vmem %s207_s12, 16  ;;  %s1029_s8 = scalar_lea.vmem %s207_s12, 32 }
  0x3f   : > { %p1023_p13 = scmp.ne.s32.totalorder %s207_s12, %s1022_s9  ;;  %p1030_p8 = scmp.lt.s32.totalorder %s207_s12, %s207_s12 }
  0x40   : > { %p1031_p9 = scmp.lt.s32.totalorder %s1029_s8, %s1022_s9 }
  0x41   : > { %p1025_p0 = pnand %p1023_p13, %p983_p7 }
  0x42   : > { %p1032_p10 = por %p1031_p9, %p1030_p8 }
  0x43   : > { %p1026_p3 = pneg %p1025_p0 }
  0x45   : > { %p1033_p1 = pnand %p1032_p10, %p1026_p3 }
  0x47   : > { %1036 = shalt.err (!%p1033_p1)
}
  0x48   : > { %890 = dma.hbm_to_vmem [thread:$0]  (!%p1319_p2), %s1585_s2, 16, %s207_s12, [#allocation6]  }
  0x49   : > { %s789_s27 = sshll.u32 %s1347_s15, 5  ;;  %s832_s13 = sshll.u32 %s1203_s21, 9 }
  0x4a   : > { %s1374_s17 = scalar_lea.hbm %s1583_s0, %s832_s13  ;;  %s221_s10 = scalar_lea.vmem [#allocation2], %s789_s27 }
  0x4b   : > { %s229_s23 = sshll.u32 %s221_s10, 4  ;;  %p1603_p7 = scmp.ne.s32.totalorder %s1597_s28, 0  ;;  %s1376_s23 = int_to_ptr.vmem [resolvable:$true] %s229_s23 }
  0x4c   : > { %p1604_p4 = scmp.lt.s32.totalorder %s1203_s21, 3  ;;  %s218_s12 = scalar_lea.sflag [#allocation3], %s1347_s15 }
  0x4d   : > { %s1037_s26 = scalar_lea.hbm %s1374_s17, 512  ;;  %s1042_s28 = scalar_lea.hbm %s1583_s0, 1536 }
  0x4e   : > { %p1382_p5 = pnand %p1604_p4, %p1603_p7  ;;  %p1038_p2 = scmp.ne.s32.totalorder %s1374_s17, %s1037_s26 }
  0x4f   : > { %p1043_p13 = scmp.lt.u32.totalorder %s1374_s17, %s1583_s0  ;;  %p1044_p0 = scmp.lt.u32.totalorder %s1042_s28, %s1037_s26 }
  0x50   : > { %p1039_p6 = pneg %p1382_p5  ;;  %p1046_p8 = scmp.lt.u32.totalorder %s1037_s26, %s1374_s17 }
  0x51   : > { %p1045_p3 = por %p1044_p0, %p1043_p13 }
  0x52   : > { %p1040_p11 = pnand %p1039_p6, %p1038_p2 }
  0x53   : > { %p1047_p9 = por %p1046_p8, %p1045_p3 }
  0x54   : > { %p1041_p12 = pneg %p1040_p11 }
  0x56   : > { %p1048_p10 = pnand %p1047_p9, %p1041_p12 }
  0x58   : > { %1051 = shalt.err (!%p1048_p10)
}
  0x59   : > { %s1052_s27 = scalar_lea.vmem %s1376_s23, 512  ;;  %s1209_s13 = smov [#allocation2]  }
  0x5a   : > { %p1053_p1 = scmp.ne.s32.totalorder %s1376_s23, %s1052_s27  ;;  %s1057_s14 = sshll.u32 %s1209_s13, 4  ;;  %s1058_s14 = int_to_ptr.vmem [resolvable:$false] %s1057_s14 }
  0x5b   : > { %s1059_s16 = scalar_lea.vmem %s1058_s14, 1024  ;;  %p1060_p2 = scmp.lt.s32.totalorder %s1376_s23, %s1058_s14 }
  0x5c   : > { %p1055_p7 = pnand %p1053_p1, %p1039_p6  ;;  %p1061_p11 = scmp.lt.s32.totalorder %s1059_s16, %s1052_s27 }
  0x5e   : > { %p1056_p4 = pneg %p1055_p7  ;;  %p1062_p13 = por %p1061_p11, %p1060_p2 }
  0x60   : > { %p1063_p0 = pnand %p1062_p13, %p1056_p4 }
  0x62   : > { %1066 = shalt.err (!%p1063_p0)
}
  0x63   : > { %s1210_s10 = smov 256   ;;  %s1211_s26 = smov 16  }
  0x64   : > { %894 = dma.hbm_to_vmem [thread:$0]  (!%p1382_p5), %s1374_s17, 512, %s1376_s23, %s218_s12, %s1210_s10, %s1210_s10, %s1211_s26  }
  0x65   : > { %s793_s9 = sshll.u32 %s1347_s15, 4  ;;  %s833_s8 = sshll.u32 %s1203_s21, 8 }
  0x66   : > { %s1419_s24 = scalar_lea.hbm %s1586_s3, %s833_s8  ;;  %s243_s27 = scalar_lea.vmem [#allocation8], %s793_s9 }
  0x67   : > { %s250_s13 = sshll.u32 %s243_s27, 4  ;;  %s240_s14 = scalar_lea.sflag [#allocation9], %s1347_s15  ;;  %s1421_s13 = int_to_ptr.vmem [resolvable:$true] %s250_s13 }
  0x68   : > { %s1067_s16 = scalar_lea.hbm %s1419_s24, 256  ;;  %s1072_s12 = scalar_lea.hbm %s1586_s3, 768 }
  0x69   : > { %p1068_p12 = scmp.ne.s32.totalorder %s1419_s24, %s1067_s16  ;;  %p1073_p9 = scmp.lt.u32.totalorder %s1419_s24, %s1586_s3 }
  0x6a   : > { %p1074_p10 = scmp.lt.u32.totalorder %s1072_s12, %s1067_s16  ;;  %p1076_p7 = scmp.lt.u32.totalorder %s1067_s16, %s1419_s24 }
  0x6b   : > { %p1070_p3 = pnand %p1068_p12, %p1039_p6 }
  0x6c   : > { %p1075_p1 = por %p1074_p10, %p1073_p9 }
  0x6d   : > { %p1071_p8 = pneg %p1070_p3 }
  0x6e   : > { %p1077_p4 = por %p1076_p7, %p1075_p1 }
  0x70   : > { %p1078_p2 = pnand %p1077_p4, %p1071_p8 }
  0x72   : > { %1081 = shalt.err (!%p1078_p2)
}
  0x73   : > { %s1082_s9 = scalar_lea.vmem %s1421_s13, 256  ;;  %s1212_s8 = smov [#allocation8]  }
  0x74   : > { %p1083_p11 = scmp.ne.s32.totalorder %s1421_s13, %s1082_s9  ;;  %s1087_s28 = sshll.u32 %s1212_s8, 4  ;;  %s1088_s28 = int_to_ptr.vmem [resolvable:$false] %s1087_s28 }
  0x75   : > { %s1089_s11 = scalar_lea.vmem %s1088_s28, 512  ;;  %p1090_p12 = scmp.lt.s32.totalorder %s1421_s13, %s1088_s28 }
  0x76   : > { %p1085_p13 = pnand %p1083_p11, %p1039_p6  ;;  %p1091_p3 = scmp.lt.s32.totalorder %s1089_s11, %s1082_s9 }
  0x78   : > { %p1086_p0 = pneg %p1085_p13  ;;  %p1092_p9 = por %p1091_p3, %p1090_p12 }
  0x7a   : > { %p1093_p10 = pnand %p1092_p9, %p1086_p0 }
  0x7c   : > { %1096 = shalt.err (!%p1093_p10)
}
  0x7d   : > { %s1213_s27 = smov 128   ;;  %s1214_s16 = smov 8  }
  0x7e   : > { %897 = dma.hbm_to_vmem [thread:$0]  (!%p1382_p5), %s1419_s24, 256, %s1421_s13, %s240_s14, %s1213_s27, %s1213_s27, %s1214_s16  }
  0x7f   : > { %p1606_p6 = scmp.ne.s32.totalorder %s1601_s7, 0 }
  0x80   : > { %s1452_s17 = sand.u32 (!%p1606_p6), 1, %s1195_s19   ;;  %p1607_p8 = scmp.ne.s32.totalorder (!%p1606_p6), %s1598_s29, 0 }
  0x81   : > { %262 = sbr.rel (%p1606_p6) target bundleno = 941 (0x3ad), region = 36  ;;  %s797_s23 = sshll.u32 (!%p1606_p6), %s1452_s17, 5 }
  0x82   : > { %s265_s12 = scalar_lea.sflag (!%p1606_p6), [#allocation3], %s1452_s17  ;;  %s1456_s10 = scalar_lea.vmem (!%p1606_p6), [#allocation2], %s797_s23 }
  0x88   : > { %1170 = dma.done.wait (%p1607_p8), %s265_s12, 512  }
  0x89   : > { %1172 = vsyncadd (%p1607_p8), %s265_s12, 4294966784  ;;  %p1608_p5 = scmp.eq.s32.totalorder %s1272_s22, 0 }
  0x8b   : > { %1174 = dma.done.wait (%p1608_p5), [#allocation6], 2064   ;;  %p1609_p1 = pmov %p1608_p5 }
  0x8c   : > { %s800_s7 = sshll.u32 %s1452_s17, 4  ;;  %s282_s15 = scalar_lea.sflag [#allocation9], %s1452_s17 }
  0x8d   : > { %1176 = vsyncadd (%p1609_p1), [#allocation6], 4294965232  ;;  %s1468_s25 = scalar_lea.vmem [#allocation8], %s800_s7 }
  0x8e   : > { %1178 = dma.done.wait (%p1607_p8), %s282_s15, 256  }
  0x8f   : > { %1180 = vsyncadd (%p1607_p8), %s282_s15, 4294967040  ;;  %v957_v0 = vld [vmem:[#allocation5 + $0x40] sm:$0xff]   ;;  %v959_v2 = vld [vmem:[#allocation5 + $0x48] sm:$0xff]   ;;  %v1215_v23 = vmov 0   ;;  %s801_s29 = sshll.u32 %s1452_s17, 3  ;;  %v536_v41 = vlaneseq  ;;  %v1216_v49 = vmov 0.0  }
  0x90   : > { %v958_v1 = vld [vmem:[#allocation5] sm:$0xff]   ;;  %842 = vmatprep.subr.bf16.mxu0 %v957_v0  ;;  %v960_v3 = vld [vmem:[#allocation5 + $0x8] sm:$0xff]   ;;  %v961_v4 = vld [vmem:[#allocation5 + $0x50] sm:$0xff]   ;;  %955 = vset.pattern.permute.xlu1 %v1215_v23  ;;  %s1483_s24 = scalar_lea.vmem [#allocation10], %s801_s29  ;;  %vm568_vm8 = vcmask 7168   ;;  %s836_s14 = sshll.u32 %s1272_s22, 7 }
  0x91   : > { %843 = vmatpush3.bf16.msra.mxu0 %v958_v1  ;;  %v962_v5 = vld [vmem:[#allocation5 + $0x10] sm:$0xff]   ;;  %v963_v6 = vld [vmem:[#allocation5 + $0x58] sm:$0xff]   ;;  %v965_v8 = vld [vmem:[#allocation5 + $0x60] sm:$0xff]   ;;  %956 = vset.pattern.permute.xlu0 %v1215_v23  ;;  %v1487_v43 = vand.u32 127, %v536_v41  ;;  %s624_s13 = sshll.u32 %s1483_s24, 4  ;;  %s1504_s8 = scalar_lea.hbm %s1587_s4, %s836_s14  ;;  %s1497_s13 = int_to_ptr.vmem [resolvable:$true] %s624_s13 }
  0x92   : > { %844 = vmatprep.subr.bf16.mxu0 %v959_v2  ;;  %v964_v7 = vld [vmem:[#allocation5 + $0x18] sm:$0xff]   ;;  %v966_v9 = vld [vmem:[#allocation5 + $0x20] sm:$0xff]   ;;  %v967_v10 = vld [vmem:[#allocation5 + $0x68] sm:$0xff]   ;;  %s606_s28 = scalar_lea.sflag [#allocation4], %s1452_s17  ;;  %s1097_s11 = scalar_lea.vmem %s1497_s13, 128 }
  0x93   : > { %v327_v11 = vld [vmem:[%s1456_s10 + $0x8] sm:$0xff]  ;;  %v329_v12 = vld [vmem:[%s1456_s10 + $0x18] sm:$0xff]  ;;  %v969_v15 = vld [vmem:[#allocation5 + $0x70] sm:$0xff]   ;;  %p1098_p7 = scmp.ne.s32.totalorder %s1497_s13, %s1097_s11  ;;  %p1610_p4 = scmp.ne.s32.totalorder %s1599_s30, 0 }
  0x94   : > { %v331_v13 = vpack.c.bf16 %v329_v12, %v327_v11  ;;  %v968_v14 = vld [vmem:[#allocation5 + $0x28] sm:$0xff]   ;;  %v970_v16 = vld [vmem:[#allocation5 + $0x30] sm:$0xff]   ;;  %v971_v17 = vld [vmem:[#allocation5 + $0x78] sm:$0xff]   ;;  %s1217_s27 = smov [#allocation10]  }
  0x95   : > { %845 = vmatpush3.bf16.msra.mxu0 %v960_v3  ;;  %v972_v18 = vld [vmem:[#allocation5 + $0x38] sm:$0xff]   ;;  %v326_v19 = vld [vmem:[%s1456_s10] sm:$0xff]  ;;  %v328_v20 = vld [vmem:[%s1456_s10 + $0x10] sm:$0xff]  ;;  %p1099_p2 = pnand %p1098_p7, %p1610_p4  ;;  %s1101_s16 = sshll.u32 %s1217_s27, 4  ;;  %s1102_s16 = int_to_ptr.vmem [resolvable:$false] %s1101_s16 }
  0x96   : > { %846 = vmatprep.subr.bf16.mxu0 %v961_v4  ;;  %499 = vmatprep.mubr.bf16.mxu0 %v331_v13  ;;  %v330_v21 = vpack.c.bf16 %v328_v20, %v326_v19  ;;  %v524_v22 = vld [vmem:[%s1468_s25] sm:$0xff]  ;;  %v525_v24 = vld [vmem:[%s1468_s25 + $0x8] sm:$0xff]  ;;  %s1103_s23 = scalar_lea.vmem %s1102_s16, 256  ;;  %p1104_p13 = scmp.lt.s32.totalorder %s1497_s13, %s1102_s16 }
  0x97   : > { %547 = vperm.xlu1 %955, %v524_v22   ;;  %v803_v26 = vld [vmem:[#allocation7] ss:$0 sm:$0xff]  ;;  %vm526_vm2 = vcmp.ge.s32.totalorder %v524_v22, 0  ;;  %vm528_vm3 = vcmp.lt.s32.totalorder %v524_v22, 100  ;;  %vm527_vm4 = vcmp.ge.s32.totalorder %v525_v24, 0  ;;  %vm529_vm5 = vcmp.lt.s32.totalorder %v525_v24, 100  ;;  %p1100_p11 = pneg %p1099_p2  ;;  %p1105_p0 = scmp.lt.s32.totalorder %s1103_s23, %s1097_s11 }
  0x98   : > { %vm530_vm6 = vmand %vm526_vm2, %vm528_vm3 }
  0x99   : > { %847 = vmatpush3.bf16.msra.mxu0 %v962_v5  ;;  %vm531_vm7 = vmand %vm527_vm4, %vm529_vm5  ;;  %v822_v50 = vsel %vm530_vm6, 1.0, %v1216_v49  ;;  %p1106_p12 = por %p1105_p0, %p1104_p13 }
  0x9a   : > { %848 = vmatprep.subr.bf16.mxu0 %v963_v6  ;;  %v823_v51 = vsel %vm531_vm7, 1.0, %v1216_v49  ;;  %v581_v52 = vsel %vm568_vm8, %v822_v50, 0.0 }
  0x9b   : > { %550 = vperm.xlu1 %955, %v525_v24   ;;  %v582_v53 = vsel %vm568_vm8, %v823_v51, 0.0  ;;  %p1107_p3 = pnand %p1106_p12, %p1100_p11 }
  0x9c   : > { %v583_v54 = vadd.f32 %v582_v53, %v581_v52 }
  0x9d   : > { %849 = vmatpush3.bf16.msra.mxu0 %v964_v7 }
  0x9e   : > { %850 = vmatprep.subr.bf16.mxu0 %v965_v8 }
  0xa1   : > { %851 = vmatpush3.bf16.msra.mxu0 %v966_v9 }
  0xa2   : > { %852 = vmatprep.subr.bf16.mxu0 %v967_v10 }
  0xa5   : > { %853 = vmatpush3.bf16.msra.mxu0 %v968_v14 }
  0xa6   : > { %854 = vmatprep.subr.bf16.mxu0 %v969_v15 }
  0xa9   : > { %855 = vmatpush3.bf16.msra.mxu0 %v970_v16 }
  0xaa   : > { %856 = vmatprep.subr.bf16.mxu0 %v971_v17 }
  0xad   : > { %857 = vmatpush3.bf16.msra.mxu0 %v972_v18 }
  0xb0   : > { %500 = vmatmul.mubr.bf16.vlgmr.msra.gmra.mrb[0].mxu0 %v330_v21 }
 0x116   : > { %v548_v42 = vpop.permute.xlu1 %547 }
 0x117   : > { %vm552_vm0 = vcmp.eq.s32.totalorder %v1487_v43, %v548_v42 }
 0x11a   : > { %v551_v45 = vpop.permute.xlu1 %550 }
 0x11b   : > { %vm553_vm1 = vcmp.eq.s32.totalorder %v1487_v43, %v551_v45 }
 0x183   : > { %v858_v25 = vpop.f32.mrb[0].mxu0 }
 0x184   : > { %v859_v27 = vpop.f32.mrb[1].mxu0 }
 0x185   : > { %v860_v28 = vadd.f32 %v859_v27, %v858_v25  ;;  %v861_v29 = vpop.f32.mrb[2].mxu0 }
 0x186   : > { %v862_v30 = vpop.f32.mrb[3].mxu0 }
 0x187   : > { %v502_v31 = vadd.f32 %v860_v28, %v803_v26  ;;  %v863_v32 = vadd.f32 %v862_v30, %v861_v29 }
 0x189   : > { %v505_v33 = vadd.f32 %v863_v32, %v803_v26  ;;  %508 = vmax.xlane.f32.xlu0 %v502_v31 }
 0x18b   : > { %v840_v34 = vpack.c.bf16 %v505_v33, %v502_v31 }
 0x18d   : > { %510 = vmax.xlane.f32.xlu0 %v505_v33  ;;  %841 = vst [vmem:[%s1483_s24] sm:$0xff] %v840_v34  }
 0x216   : > { %v509_v35 = vpop.xlane.xlu0 %508 }
 0x217   : > { %v522_v36 = vsub.f32 %v502_v31, %v509_v35 }
 0x219   : > { %v538_v37 = vmul.f32 1.442695, %v522_v36  ;;  %v554_v47 = vsel %vm552_vm0, %v522_v36, 0.0 }
 0x21a   : > { %v511_v38 = vpop.xlane.xlu0 %510 }
 0x21b   : > { %973 = vpow2.f32 %v538_v37  ;;  %v523_v39 = vsub.f32 %v505_v33, %v511_v38 }
 0x21d   : > { %v540_v40 = vmul.f32 1.442695, %v523_v39  ;;  %v555_v48 = vsel %vm553_vm1, %v523_v39, 0.0 }
 0x21f   : > { %975 = vpow2.f32 %v540_v40 }
 0x225   : > { %v974_v44 = vpop.eup %973 }
 0x226   : > { %542 = vadd.xlane.f32.xlu0 %v974_v44 }
 0x229   : > { %v976_v46 = vpop.eup %975 }
 0x22a   : > { %556 = vadd.xlane.f32.xlu0 %v554_v47  ;;  %544 = vadd.xlane.f32.xlu1 %v976_v46 }
 0x22e   : > { %558 = vadd.xlane.f32.xlu0 %v555_v48 }
 0x2b3   : > { %v543_v55 = vpop.xlane.xlu0 %542 }
 0x2b4   : > { %977 = vlog2.f32 %v543_v55 }
 0x2b7   : > { %v545_v56 = vpop.xlane.xlu1 %544  ;;  %v557_v58 = vpop.xlane.xlu0 %556 }
 0x2b8   : > { %979 = vlog2.f32 %v545_v56 }
 0x2bb   : > { %v559_v63 = vpop.xlane.xlu0 %558 }
 0x2be   : > { %v978_v57 = vpop.eup %977 }
 0x2bf   : > { %v561_v59 = vmul.f32 0.6931472, %v978_v57 }
 0x2c1   : > { %v564_v60 = vsub.f32 %v561_v59, %v557_v58 }
 0x2c2   : > { %v980_v61 = vpop.eup %979 }
 0x2c3   : > { %v563_v62 = vmul.f32 0.6931472, %v980_v61  ;;  %v566_v0 = vmul.f32 %v822_v50, %v564_v60 }
 0x2c5   : > { %v565_v1 = vsub.f32 %v563_v62, %v559_v63  ;;  %v569_v3 = vsel %vm568_vm8, %v566_v0, 0.0 }
 0x2c7   : > { %v567_v2 = vmul.f32 %v823_v51, %v565_v1 }
 0x2c9   : > { %v570_v4 = vsel %vm568_vm8, %v567_v2, 0.0 }
 0x2ca   : > { %v571_v5 = vadd.f32 %v570_v4, %v569_v3 }
 0x2cc   : > { %572 = vadd.xlane.f32.xlu0 %v571_v5 }
 0x2d0   : > { %584 = vadd.xlane.f32.xlu0 %v583_v54 }
 0x2d1   : > { %1110 = shalt.err (!%p1107_p3)
}
 0x2d2   : > { %s1111_s12 = scalar_lea.hbm %s1504_s8, 128  ;;  %s1115_s15 = scalar_lea.hbm %s1587_s4, 384 }
 0x2d3   : > { %p1112_p9 = scmp.ne.s32.totalorder %s1504_s8, %s1111_s12  ;;  %p1116_p8 = scmp.lt.u32.totalorder %s1504_s8, %s1587_s4 }
 0x2d4   : > { %p1117_p5 = scmp.lt.u32.totalorder %s1115_s15, %s1111_s12  ;;  %p1119_p7 = scmp.lt.u32.totalorder %s1111_s12, %s1504_s8 }
 0x2d5   : > { %p1113_p10 = pnand %p1112_p9, %p1610_p4 }
 0x2d6   : > { %p1118_p1 = por %p1117_p5, %p1116_p8 }
 0x2d7   : > { %p1114_p6 = pneg %p1113_p10 }
 0x2d8   : > { %p1120_p2 = por %p1119_p7, %p1118_p1 }
 0x2da   : > { %p1121_p11 = pnand %p1120_p2, %p1114_p6 }
 0x2dc   : > { %1124 = shalt.err (!%p1121_p11)
}
 0x2dd   : > { %s1218_s26 = smov 64   ;;  %s1219_s9 = smov 4   ;;  %v594_v20 = vshrl.u32 %v536_v41, 7  ;;  %vm598_vm10 = vcmp.eq.s32.totalorder %v1487_v43, 1  ;;  %vm596_vm11 = vcmp.eq.s32.totalorder %v1487_v43, 0 }
 0x2de   : > { %880 = dma.vmem_to_hbm [thread:$0]  (%p1610_p4), %s1497_s13, 128, %s1504_s8, %s606_s28, %s1218_s26, %s1218_s26, %s1219_s9  }
 0x2df   : > { %vm595_vm9 = vcmp.eq.s32.totalorder %v594_v20, 0  ;;  %s321_s8 = scalar_lea.vmem [#allocation11], %s801_s29  ;;  %s1540_s23 = scalar_lea.hbm %s1588_s5, %s836_s14 }
 0x2e0   : > { %vm599_vm12 = vmand %vm595_vm9, %vm598_vm10  ;;  %s640_s28 = sshll.u32 %s321_s8, 4  ;;  %s611_s29 = scalar_lea.sflag [#allocation12], %s1452_s17  ;;  %s1542_s28 = int_to_ptr.vmem [resolvable:$true] %s640_s28 }
 0x2e1   : > { %vm597_vm13 = vmand %vm595_vm9, %vm596_vm11  ;;  %s1125_s12 = scalar_lea.vmem %s1542_s28, 128  ;;  %s1220_s10 = smov [#allocation11]  }
 0x2e2   : > { %p1126_p13 = scmp.ne.s32.totalorder %s1542_s28, %s1125_s12  ;;  %s1129_s22 = sshll.u32 %s1220_s10, 4  ;;  %s1130_s22 = int_to_ptr.vmem [resolvable:$false] %s1129_s22 }
 0x2e3   : > { %s1131_s7 = scalar_lea.vmem %s1130_s22, 256  ;;  %p1132_p3 = scmp.lt.s32.totalorder %s1542_s28, %s1130_s22 }
 0x2e4   : > { %p1127_p0 = pnand %p1126_p13, %p1610_p4  ;;  %p1133_p9 = scmp.lt.s32.totalorder %s1131_s7, %s1125_s12 }
 0x2e6   : > { %p1128_p12 = pneg %p1127_p0  ;;  %p1134_p10 = por %p1133_p9, %p1132_p3 }
 0x2e8   : > { %p1135_p6 = pnand %p1134_p10, %p1128_p12 }
 0x359   : > { %v573_v6 = vpop.xlane.xlu0 %572 }
 0x35a   : > { %v574_v7 = vrot.slane %v573_v6, 4 }
 0x35c   : > { %v575_v8 = vadd.f32 %v574_v7, %v573_v6 }
 0x35d   : > { %v585_v9 = vpop.xlane.xlu0 %584 }
 0x35e   : > { %v576_v10 = vrot.slane %v575_v8, 2  ;;  %v586_v11 = vrot.slane %v585_v9, 4 }
 0x360   : > { %v587_v12 = vadd.f32 %v586_v11, %v585_v9  ;;  %v577_v13 = vadd.f32 %v576_v10, %v575_v8 }
 0x362   : > { %v588_v14 = vrot.slane %v587_v12, 2  ;;  %v578_v15 = vrot.slane %v577_v13, 1 }
 0x364   : > { %v589_v16 = vadd.f32 %v588_v14, %v587_v12  ;;  %v579_v17 = vadd.f32 %v578_v15, %v577_v13 }
 0x366   : > { %864 = vpush %v579_v17  ;;  %v590_v18 = vrot.slane %v589_v16, 1 }
 0x368   : > { %v591_v19 = vadd.f32 %v590_v18, %v589_v16 }
 0x36a   : > { %866 = vpush %v591_v19 }
 0x397   : > { %s865_s13 = spop %864 }
 0x398   : > { %v602_v22 = vstv %s865_s13 }
 0x39b   : > { %s867_s11 = spop %866 }
 0x39c   : > { %v600_v21 = vstv %s867_s11 }
 0x39d   : > { %v601_v23 = vsel %vm599_vm12, %v600_v21, 0.0 }
 0x39e   : > { %v603_v24 = vsel %vm597_vm13, %v602_v22, %v601_v23 }
 0x39f   : > { %604 = vst [vmem:[%s321_s8] sm:$0xff] %v603_v24 }
 0x3a0   : > { %1138 = shalt.err (!%p1135_p6)
}
 0x3a1   : > { %s1139_s17 = scalar_lea.hbm %s1540_s23, 128  ;;  %s1143_s25 = scalar_lea.hbm %s1588_s5, 384 }
 0x3a2   : > { %p1140_p8 = scmp.ne.s32.totalorder %s1540_s23, %s1139_s17  ;;  %p1144_p7 = scmp.lt.u32.totalorder %s1540_s23, %s1588_s5 }
 0x3a3   : > { %p1145_p2 = scmp.lt.u32.totalorder %s1143_s25, %s1139_s17  ;;  %p1147_p13 = scmp.lt.u32.totalorder %s1139_s17, %s1540_s23 }
 0x3a4   : > { %p1141_p5 = pnand %p1140_p8, %p1610_p4 }
 0x3a5   : > { %p1146_p11 = por %p1145_p2, %p1144_p7 }
 0x3a6   : > { %p1142_p1 = pneg %p1141_p5 }
 0x3a7   : > { %p1148_p0 = por %p1147_p13, %p1146_p11 }
 0x3a9   : > { %p1149_p12 = pnand %p1148_p0, %p1142_p1 }
 0x3ab   : > { %1152 = shalt.err (!%p1149_p12)
}
 0x3ac   : > { %881 = dma.vmem_to_hbm [thread:$0]  (%p1610_p4), %s1542_s28, 128, %s1540_s23, %s611_s29  }
 0x3ad PF: > { %p910_p3 = scmp.ge.s32.totalorder %s1203_s21, 2  ;;  %s652_s9 = sand.u32 1, %s1191_s18  }
 0x3ae   : > { %p1611_p9 = scmp.ne.s32.totalorder %s1600_s6, 0  ;;  %s653_s13 = scalar_lea.sflag [#allocation4], %s652_s9 }
 0x3b0   : > { %p899_p10 = pnand %p910_p3, %p1611_p9 }
 0x3b2   : > { %1182 = dma.done.wait (!%p899_p10), %s653_s13, 128  }
 0x3b3   : > { %1184 = vsyncadd (!%p899_p10), %s653_s13, 4294967168  ;;  %s662_s8 = scalar_lea.sflag [#allocation12], %s652_s9 }
 0x3b4   : > { %1186 = dma.done.wait (!%p899_p10), %s662_s8, 128  }
 0x3b5   : > { %1188 = vsyncadd (!%p899_p10), %s662_s8, 4294967168  ;;  %s1612_s21 = sld [smem:[#allocation18_spill]]  ;;  %s1613_s30 = sld [smem:[#allocation19_spill]] }
 0x3b6   : > { %s1614_s18 = smov %s1195_s19  ;;  %s1615_s19 = smov %s1199_s20 }
 0x3bb   : > { %p26_p4 = scmp.ge.s32.totalorder %s1612_s21, 5   ;;  %s1616_s20 = smov %s1613_s30 }
 0x3bd   :  { %28 = sbr.rel (!%p26_p4) target bundleno = 10 (0xa), region = 119 }
 0x3c4   :  { %667 = vsyncpa [#allocation3], 1 }
 0x3c5   :  { %669 = vsyncpa [#allocation3 + $0x1], 1 }
 0x3c6   :  { %670 = vsyncpa [#allocation6], 1 }
 0x3c7   :  { %671 = vsyncpa [#allocation9], 1 }
 0x3c8   :  { %673 = vsyncpa [#allocation9 + $0x1], 1 }
 0x3c9   :  { %674 = vsyncpa [#allocation4], 1 }
 0x3ca   :  { %676 = vsyncpa [#allocation4 + $0x1], 1 }
 0x3cb   :  { %677 = vsyncpa [#allocation12], 1 }
 0x3cc   :  { %679 = vsyncpa [#allocation12 + $0x1], 1 }

</bundles_post_ra>
